<compile_context>
chip_gen: v6e
topology: v6e:2x2x1
jax: 0.10.0
libtpu: 0.0.40
codegen_flags: <defaults>
</compile_context>

<pallas_src>
import jax
import jax.numpy as jnp
import numpy as np
from jax.experimental import pallas as pl
from jax.experimental.pallas import tpu as pltpu

HIGH_CONF_THRESH = 0.6
NORM_EPS = 1e-12      # F.normalize eps
MINMAX_EPS = 1e-5     # loc-map min/max normalization eps

# "A @ B.T" dimension numbers (contract last dims, no batch dims).
NT_DIMS = (((1,), (1,)), ((), ()))


def _mm_nt(a, b):
    # a @ b.T without materializing the transpose (MXU dot_general).
    return jax.lax.dot_general(a, b, NT_DIMS, preferred_element_type=jnp.float32)


def _make_fnac_kernel(tau, B, P, C, D):
    inv_tau = 1.0 / float(tau)
    inv_p = 1.0 / float(P)
    inv_b = 1.0 / float(B)
    inv_bb = 1.0 / float(B * B)
    norm_eps_sq = NORM_EPS * NORM_EPS

    def kernel(imgf_ref, audf_ref, wimg_ref, bimg_ref, waudt_ref, baud_ref,
               loss_ref, savl_ref, aud_sc, frg_sc, avg_sc, logt_sc):
        n = pl.program_id(0)

        # ---- step 0: audio projection + F.normalize, kept resident in VMEM ----
        @pl.when(n == 0)
        def _():
            aud0 = jnp.dot(audf_ref[...], waudt_ref[...],
                           preferred_element_type=jnp.float32) + baud_ref[...]
            ss = jnp.sum(aud0 * aud0, axis=-1, keepdims=True)
            aud_sc[...] = aud0 * jax.lax.rsqrt(jnp.maximum(ss, norm_eps_sq))   # (B, D)
            frg_sc[...] = jnp.zeros_like(frg_sc)
            avg_sc[...] = jnp.zeros_like(avg_sc)
            logt_sc[...] = jnp.zeros_like(logt_sc)

        # ---- per-image 1x1-conv projection (bf16 MXU operands, f32 accum) ------
        # (D, C) @ (C, P) -> (D, P); bias broadcast happens once per grid step.
        img_n = jnp.dot(wimg_ref[...], imgf_ref[0],
                        preferred_element_type=jnp.float32) + bimg_ref[...]
        # F.normalize over the channel axis (sublane reduce) via EUP rsqrt.
        nrm2 = jnp.sum(img_n * img_n, axis=0, keepdims=True)                   # (1, P)
        img_n = img_n * jax.lax.rsqrt(jnp.maximum(nrm2, norm_eps_sq))          # (D, P)

        aud = aud_sc[...]                                                      # (B, D)
        # Slogits[n, :, :] in (M, P) layout: (B, D) @ (D, P) / tau  (kept f32).
        s_n = jnp.dot(aud, img_n, preferred_element_type=jnp.float32) * inv_tau  # (B, P)

        # localisation map Slogits[n, n, :] — select row n with a one-hot reduce.
        row_sel = (jax.lax.broadcasted_iota(jnp.int32, (B, P), 0) == n)
        loc_n = jnp.sum(jnp.where(row_sel, s_n, 0.0), axis=0, keepdims=True)   # (1, P)
        savl_ref[0] = loc_n                                                    # lane-dense store

        lmin = jnp.min(loc_n, axis=1, keepdims=True)
        lmax = jnp.max(loc_n, axis=1, keepdims=True)
        # exact reciprocal here: the 0.6 threshold comparison must not flip.
        loc_norm = (loc_n - lmin) * pl.reciprocal(lmax - lmin + MINMAX_EPS,
                                                  approx=False)
        mask_n = (loc_norm > HIGH_CONF_THRESH).astype(jnp.float32)             # (1, P)

        # frg / img_avg rows via one NT matmul -> lane-dense (2, D), no transposes.
        sel = jnp.concatenate([mask_n, jnp.ones_like(mask_n)], axis=0)         # (2, P)
        stats = jax.lax.dot_general(sel, img_n, NT_DIMS,
                                    preferred_element_type=jnp.float32) * inv_p  # (2, D)

        # Scatter into the per-image rows of the VMEM stat buffers with a vectorized
        # masked RMW (no dynamic lane/sublane indexing, no relayouts).
        row_mask_bd = (jax.lax.broadcasted_iota(jnp.int32, (B, D), 0) == n)
        frg_sc[...] = jnp.where(row_mask_bd, stats[0:1, :], frg_sc[...])
        avg_sc[...] = jnp.where(row_mask_bd, stats[1:2, :], avg_sc[...])

        # logits[n, m] = max_p Slogits[n, m, p]; arrives as a sublane column over m,
        # stored as column n of logt_sc  ->  logt_sc = logits^T.
        logit_col = jnp.max(s_n, axis=1, keepdims=True)                        # (B, 1)
        col_mask_bb = (jax.lax.broadcasted_iota(jnp.int32, (B, B), 1) == n)
        logt_sc[...] = jnp.where(col_mask_bb, logit_col, logt_sc[...])

        # ---- last step: pairwise-attention losses (everything stays in vregs) --
        @pl.when(n == B - 1)
        def _():
            aud_f = aud_sc[...]                                                # (B, D)
            frg = frg_sc[...]                                                  # (B, D)
            img_avg = avg_sc[...]                                              # (B, D)
            L = logt_sc[...]                                                   # (B, B) = logits^T

            aud_attn = _mm_nt(aud_f, aud_f) * inv_tau
            img_attn = _mm_nt(img_avg, img_avg) * inv_tau
            frg_attn = _mm_nt(frg, frg) * inv_tau

            eye = (jax.lax.broadcasted_iota(jnp.int32, (B, B), 0) ==
                   jax.lax.broadcasted_iota(jnp.int32, (B, B), 1)).astype(jnp.float32)

            def ce(x, axis):
                # cross entropy vs labels = arange(B), reduction='mean'
                m = jnp.max(x, axis=axis, keepdims=True)
                lse = m + jnp.log(jnp.sum(jnp.exp(x - m), axis=axis, keepdims=True))
                diag = jnp.sum(x * eye, axis=axis, keepdims=True)
                return jnp.sum(lse - diag, keepdims=True) * inv_b              # (1, 1)

            # CE(logits) + CE(logits.T) == ce over both axes of logits^T.
            loss_main = ce(L, 0) + ce(L, 1)

            def softmax0(x):
                # column softmax == (row softmax of x^T)^T; EUP reciprocal.
                m = jnp.max(x, axis=0, keepdims=True)
                e = jnp.exp(x - m)
                return e * pl.reciprocal(jnp.sum(e, axis=0, keepdims=True), approx=True)

            # aud/img/frg attention matrices are symmetric, so comparing everything
            # in the transposed (axis-0 softmax) frame gives identical L1 losses
            # without any relayouts.
            sm_aud = softmax0(aud_attn)
            sm_log = softmax0(L)
            sm_frg = softmax0(frg_attn)
            sm_img = softmax0(img_attn)
            l1 = jnp.sum(jnp.abs(sm_aud - sm_log), keepdims=True) * inv_bb
            l2 = jnp.sum(jnp.abs(sm_aud - sm_frg), keepdims=True) * inv_bb
            l3 = jnp.sum(jnp.abs(sm_img - sm_log), keepdims=True) * inv_bb

            # single (1, 4) loss store
            loss_ref[...] = jnp.concatenate([loss_main, l1, l2, l3], axis=1)

    return kernel


def fnac_head_pallas(img_feat_nchw, aud_feat, w_img, b_img, w_aud_t, b_aud, tau):
    """FNAC head (post-backbone).

    img_feat_nchw: (B, 512, 7, 7) imgnet features
    aud_feat:      (B, 512)       audnet features
    w_img: (D, C) Conv2d(512, D, 1x1) weight (squeezed);  b_img: (D,)
    w_aud_t: (C, D) = aud_proj.weight.T (pre-transposed once);  b_aud: (D,)
    Returns (losses (4,), Savl (B, H, W)).
    """
    B, C, H, W = img_feat_nchw.shape
    P = H * W
    D = w_img.shape[0]

    # bf16 MXU operands (cast in the wrapper so the HBM->VMEM DMA also moves bf16);
    # accumulation and all vector math inside the kernel stay f32.
    imgf = img_feat_nchw.reshape(B, C, P).astype(jnp.bfloat16)
    audf = aud_feat.astype(jnp.bfloat16)
    w_img_b = w_img.astype(jnp.bfloat16)
    w_aud_t_b = w_aud_t.astype(jnp.bfloat16)
    b_img_col = b_img.reshape(D, 1).astype(jnp.float32)
    b_aud_row = b_aud.reshape(1, D).astype(jnp.float32)

    cost = pl.CostEstimate(
        flops=int(2 * B * D * C * P + 2 * B * C * D + 2 * B * B * D * P
                  + 4 * B * P * D + 6 * B * B * D),
        transcendentals=int(B * P + 8 * B * B + 4 * B),
        bytes_accessed=int(2 * (B * C * P + B * C + D * C + C * D)
                           + 4 * (2 * D) + 4 * (B * P + 4)),
    )

    kernel = _make_fnac_kernel(tau, B, P, C, D)
    loss_row, savl = pl.pallas_call(
        kernel,
        out_shape=(jax.ShapeDtypeStruct((1, 4), jnp.float32),     # [loss, fnac1, fnac2, fnac3]
                   jax.ShapeDtypeStruct((B, 1, P), jnp.float32)), # Savl, lane-dense per image
        grid=(B,),
        in_specs=[
            pl.BlockSpec((1, C, P), lambda n: (n, 0, 0)),   # per-image slab (prefetched)
            pl.BlockSpec((B, C), lambda n: (0, 0)),         # resident
            pl.BlockSpec((D, C), lambda n: (0, 0)),         # resident
            pl.BlockSpec((D, 1), lambda n: (0, 0)),
            pl.BlockSpec((C, D), lambda n: (0, 0)),
            pl.BlockSpec((1, D), lambda n: (0, 0)),
        ],
        out_specs=(pl.BlockSpec((1, 4), lambda n: (0, 0)),
                   pl.BlockSpec((1, 1, P), lambda n: (n, 0, 0))),
        scratch_shapes=[
            pltpu.VMEM((B, D), jnp.float32),   # normalized audio embeddings
            pltpu.VMEM((B, D), jnp.float32),   # frg rows
            pltpu.VMEM((B, D), jnp.float32),   # img_avg rows
            pltpu.VMEM((B, B), jnp.float32),   # logits^T
        ],
        compiler_params=pltpu.CompilerParams(dimension_semantics=("arbitrary",)),
        cost_estimate=cost,
    )(imgf, audf, w_img_b, b_img_col, w_aud_t_b, b_aud_row)

    losses = loss_row.reshape(4)
    savl_hw = savl.reshape(B, H, W)
    return losses, savl_hw


def fnac_head_ref(img_feat_nchw, aud_feat, w_img, b_img, w_aud_t, b_aud, tau):
    # Pure-JAX reference mirroring the PyTorch math (post-backbone).
    # It uses the kernel's numerical contract for the projections: bf16 MXU
    # operands, f32 accumulation (bf16 products are exact in f32).
    hp = jax.lax.Precision.HIGHEST
    B, C, H, W = img_feat_nchw.shape
    imgf = img_feat_nchw.astype(jnp.bfloat16).astype(jnp.float32)
    audf = aud_feat.astype(jnp.bfloat16).astype(jnp.float32)
    w_img_f = w_img.astype(jnp.bfloat16).astype(jnp.float32)
    w_aud_t_f = w_aud_t.astype(jnp.bfloat16).astype(jnp.float32)

    img = jnp.einsum('nchw,dc->ndhw', imgf, w_img_f, precision=hp)
    img = img + b_img[None, :, None, None]
    img = img / jnp.maximum(jnp.sqrt(jnp.sum(img * img, axis=1, keepdims=True)), NORM_EPS)
    aud = jnp.einsum('nc,cd->nd', audf, w_aud_t_f, precision=hp) + b_aud[None, :]
    aud = aud / jnp.maximum(jnp.sqrt(jnp.sum(aud * aud, axis=1, keepdims=True)), NORM_EPS)

    aud_attn = jnp.einsum('nd,md->nm', aud, aud, precision=hp) / tau
    img_avg = img.mean(axis=(2, 3))
    img_attn = jnp.einsum('nd,md->nm', img_avg, img_avg, precision=hp) / tau
    Slogits = jnp.einsum('ndhw,md->nmhw', img, aud, precision=hp) / tau
    loc = Slogits[jnp.arange(B), jnp.arange(B)]                          # (B, H, W)
    lmin = loc.min(axis=(1, 2), keepdims=True)
    lmax = loc.max(axis=(1, 2), keepdims=True)
    loc_n = (loc - lmin) / (lmax - lmin + MINMAX_EPS)
    frg = (img * (loc_n > HIGH_CONF_THRESH)[:, None]).reshape(B, -1, H * W).mean(-1)
    frg_attn = jnp.einsum('nd,md->nm', frg, frg, precision=hp) / tau
    logits = Slogits.reshape(B, B, -1).max(-1)

    def ce(x):
        return jnp.mean(jax.nn.logsumexp(x, axis=1) - x[jnp.arange(B), jnp.arange(B)])

    loss0 = ce(logits) + ce(logits.T)
    l1 = jnp.mean(jnp.abs(jax.nn.softmax(aud_attn, axis=1) - jax.nn.softmax(logits, axis=1)))
    l2 = jnp.mean(jnp.abs(jax.nn.softmax(aud_attn, axis=1) - jax.nn.softmax(frg_attn, axis=1)))
    l3 = jnp.mean(jnp.abs(jax.nn.softmax(img_attn, axis=1) - jax.nn.softmax(logits, axis=1)))
    return jnp.stack([loss0, l1, l2, l3]), loc


if __name__ == "__main__":
    B, C, H, W, D = 2, 512, 7, 7, 128
    TAU = 0.03
    key = jax.random.PRNGKey(0)
    k1, k2, k3, k4, k5, k6 = jax.random.split(key, 6)

    # Backbone outputs (stand-in for ResNet18 features — see TODO(synk) above).
    img_feat = jax.random.normal(k1, (B, C, H, W), jnp.float32)   # imgnet(image).unflatten(1,(512,7,7))
    aud_feat = jax.random.normal(k2, (B, C), jnp.float32)         # audnet(audio)

    # img_proj: Conv2d(512, dim, 1x1) weight (dim, 512), kaiming_normal_(fan_out) -> std=sqrt(2/dim)
    w_img = jax.random.normal(k3, (D, C), jnp.float32) * np.sqrt(2.0 / D).astype(np.float32)
    b_img = 0.05 * jax.random.normal(k5, (D,), jnp.float32)
    # aud_proj: Linear(512, dim) weight (dim, 512), trunc_normal_(std=0.01) (approx. normal);
    # pre-transposed ONCE to (512, dim) — weight preprocessing outside the forward pass.
    w_aud_t = jnp.transpose(jax.random.normal(k4, (D, C), jnp.float32) * 0.01)
    b_aud = 0.05 * jax.random.normal(k6, (D,), jnp.float32)

    fnac_jit = jax.jit(fnac_head_pallas, static_argnames=("tau",))
    losses, savl = fnac_jit(img_feat, aud_feat, w_img, b_img, w_aud_t, b_aud, tau=TAU)
    jax.block_until_ready((losses, savl))

    ref_losses, ref_savl = fnac_head_ref(img_feat, aud_feat, w_img, b_img, w_aud_t, b_aud, TAU)
    np.testing.assert_allclose(np.asarray(losses), np.asarray(ref_losses), rtol=1e-2, atol=1e-3)
    np.testing.assert_allclose(np.asarray(savl), np.asarray(ref_savl), rtol=1e-2, atol=1e-2)

    print("KERNEL_OK")
</pallas_src>

<mosaic_0001>
module attributes {stable_mosaic.version = 11 : i64} {
  func.func @kernel(%arg0: i32, %arg1: memref<1x512x49xbf16, #tpu.memory_space<vmem>>, %arg2: memref<2x512xbf16, #tpu.memory_space<vmem>>, %arg3: memref<128x512xbf16, #tpu.memory_space<vmem>>, %arg4: memref<128x1xf32, #tpu.memory_space<vmem>>, %arg5: memref<512x128xbf16, #tpu.memory_space<vmem>>, %arg6: memref<1x128xf32, #tpu.memory_space<vmem>>, %arg7: memref<1x4xf32, #tpu.memory_space<vmem>>, %arg8: memref<1x1x49xf32, #tpu.memory_space<vmem>>, %arg9: memref<2x128xf32, #tpu.memory_space<vmem>>, %arg10: memref<2x128xf32, #tpu.memory_space<vmem>>, %arg11: memref<2x128xf32, #tpu.memory_space<vmem>>, %arg12: memref<2x2xf32, #tpu.memory_space<vmem>>) attributes {dimension_semantics = [#tpu.dimension_semantics<arbitrary>], iteration_bounds = array<i64: 2>, scalar_prefetch = 0 : i64, scratch_operands = 4 : i64, tpu.core_type = #tpu.core_type<tc>, window_params = [{transform_indices = @transform_0, window_bounds = array<i64: 1, 512, 49>}, {pipeline_mode = #tpu.pipeline_mode<synchronous>, transform_indices = @transform_1, window_bounds = array<i64: 2, 512>}, {pipeline_mode = #tpu.pipeline_mode<synchronous>, transform_indices = @transform_2, window_bounds = array<i64: 128, 512>}, {pipeline_mode = #tpu.pipeline_mode<synchronous>, transform_indices = @transform_3, window_bounds = array<i64: 128, 1>}, {pipeline_mode = #tpu.pipeline_mode<synchronous>, transform_indices = @transform_4, window_bounds = array<i64: 512, 128>}, {pipeline_mode = #tpu.pipeline_mode<synchronous>, transform_indices = @transform_5, window_bounds = array<i64: 1, 128>}, {pipeline_mode = #tpu.pipeline_mode<synchronous>, transform_indices = @transform_6, window_bounds = array<i64: 1, 4>}, {transform_indices = @transform_7, window_bounds = array<i64: 1, 1, 49>}]} {
    %c0_i32 = arith.constant 0 : i32
    %0 = arith.cmpi eq, %arg0, %c0_i32 : i32
    %1 = arith.extui %0 : i1 to i32
    %c0_i32_0 = arith.constant 0 : i32
    %2 = arith.cmpi ne, %1, %c0_i32_0 : i32
    scf.if %2 {
      %c0_39 = arith.constant 0 : index
      %c0_40 = arith.constant 0 : index
      %81 = vector.load %arg2[%c0_39, %c0_40] : memref<2x512xbf16, #tpu.memory_space<vmem>>, vector<2x512xbf16>
      %c0_41 = arith.constant 0 : index
      %c0_42 = arith.constant 0 : index
      %82 = vector.load %arg5[%c0_41, %c0_42] : memref<512x128xbf16, #tpu.memory_space<vmem>>, vector<512x128xbf16>
      %cst_43 = arith.constant dense<0.000000e+00> : vector<2x128xf32>
      %83 = tpu.matmul %81, %82, %cst_43 {dimension_numbers = #tpu.dot_dimension_numbers<[1], [0], [0], [1], [0, 0, 1, 1], [], []>} : vector<2x512xbf16>, vector<512x128xbf16>, vector<2x128xf32> -> vector<2x128xf32>
      %c0_44 = arith.constant 0 : index
      %c0_45 = arith.constant 0 : index
      %84 = vector.load %arg6[%c0_44, %c0_45] : memref<1x128xf32, #tpu.memory_space<vmem>>, vector<1x128xf32>
      %85 = vector.broadcast %84 : vector<1x128xf32> to vector<2x128xf32>
      %86 = arith.addf %83, %85 : vector<2x128xf32>
      %87 = arith.mulf %86, %86 : vector<2x128xf32>
      %cst_46 = arith.constant dense<0.000000e+00> : vector<2xf32>
      %88 = vector.multi_reduction <add>, %87, %cst_46 [1] : vector<2x128xf32> to vector<2xf32>
      %89 = vector.shape_cast %88 : vector<2xf32> to vector<2x1xf32>
      %cst_47 = arith.constant 1.000000e-24 : f32
      %90 = vector.broadcast %cst_47 : f32 to vector<2x1xf32>
      %91 = arith.maximumf %89, %90 : vector<2x1xf32>
      %92 = math.rsqrt %91 : vector<2x1xf32>
      %93 = vector.broadcast %92 : vector<2x1xf32> to vector<2x128xf32>
      %94 = arith.mulf %86, %93 : vector<2x128xf32>
      %c0_48 = arith.constant 0 : index
      %c0_49 = arith.constant 0 : index
      %95 = vector.load %arg9[%c0_48, %c0_49] : memref<2x128xf32, #tpu.memory_space<vmem>>, vector<2x128xf32>
      tpu.vector_store %arg9[%c0_48, %c0_49], %94 {strides = array<i32>} : memref<2x128xf32, #tpu.memory_space<vmem>>, vector<2x128xf32>,
      %cst_50 = arith.constant 0.000000e+00 : f32
      %96 = vector.broadcast %cst_50 : f32 to vector<2x128xf32>
      %c0_51 = arith.constant 0 : index
      %c0_52 = arith.constant 0 : index
      %97 = vector.load %arg10[%c0_51, %c0_52] : memref<2x128xf32, #tpu.memory_space<vmem>>, vector<2x128xf32>
      tpu.vector_store %arg10[%c0_51, %c0_52], %96 {strides = array<i32>} : memref<2x128xf32, #tpu.memory_space<vmem>>, vector<2x128xf32>,
      %cst_53 = arith.constant 0.000000e+00 : f32
      %98 = vector.broadcast %cst_53 : f32 to vector<2x128xf32>
      %c0_54 = arith.constant 0 : index
      %c0_55 = arith.constant 0 : index
      %99 = vector.load %arg11[%c0_54, %c0_55] : memref<2x128xf32, #tpu.memory_space<vmem>>, vector<2x128xf32>
      tpu.vector_store %arg11[%c0_54, %c0_55], %98 {strides = array<i32>} : memref<2x128xf32, #tpu.memory_space<vmem>>, vector<2x128xf32>,
      %cst_56 = arith.constant 0.000000e+00 : f32
      %100 = vector.broadcast %cst_56 : f32 to vector<2x2xf32>
      %c0_57 = arith.constant 0 : index
      %c0_58 = arith.constant 0 : index
      %101 = vector.load %arg12[%c0_57, %c0_58] : memref<2x2xf32, #tpu.memory_space<vmem>>, vector<2x2xf32>
      tpu.vector_store %arg12[%c0_57, %c0_58], %100 {strides = array<i32>} : memref<2x2xf32, #tpu.memory_space<vmem>>, vector<2x2xf32>,
    } else {
    }
    %c0 = arith.constant 0 : index
    %c0_1 = arith.constant 0 : index
    %3 = vector.load %arg3[%c0, %c0_1] : memref<128x512xbf16, #tpu.memory_space<vmem>>, vector<128x512xbf16>
    %c0_2 = arith.constant 0 : index
    %c0_3 = arith.constant 0 : index
    %c0_4 = arith.constant 0 : index
    %4 = vector.load %arg1[%c0_2, %c0_3, %c0_4] : memref<1x512x49xbf16, #tpu.memory_space<vmem>>, vector<1x512x49xbf16>
    %5 = vector.shape_cast %4 : vector<1x512x49xbf16> to vector<512x49xbf16>
    %cst = arith.constant dense<0.000000e+00> : vector<128x49xf32>
    %6 = tpu.matmul %3, %5, %cst {dimension_numbers = #tpu.dot_dimension_numbers<[1], [0], [0], [1], [0, 0, 1, 1], [], []>} : vector<128x512xbf16>, vector<512x49xbf16>, vector<128x49xf32> -> vector<128x49xf32>
    %c0_5 = arith.constant 0 : index
    %c0_6 = arith.constant 0 : index
    %7 = vector.load %arg4[%c0_5, %c0_6] : memref<128x1xf32, #tpu.memory_space<vmem>>, vector<128x1xf32>
    %8 = vector.broadcast %7 : vector<128x1xf32> to vector<128x49xf32>
    %9 = arith.addf %6, %8 : vector<128x49xf32>
    %10 = arith.mulf %9, %9 : vector<128x49xf32>
    %cst_7 = arith.constant dense<0.000000e+00> : vector<49xf32>
    %11 = vector.multi_reduction <add>, %10, %cst_7 [0] : vector<128x49xf32> to vector<49xf32>
    %12 = vector.shape_cast %11 : vector<49xf32> to vector<1x49xf32>
    %cst_8 = arith.constant 1.000000e-24 : f32
    %13 = vector.broadcast %cst_8 : f32 to vector<1x49xf32>
    %14 = arith.maximumf %12, %13 : vector<1x49xf32>
    %15 = math.rsqrt %14 : vector<1x49xf32>
    %16 = vector.broadcast %15 : vector<1x49xf32> to vector<128x49xf32>
    %17 = arith.mulf %9, %16 : vector<128x49xf32>
    %c0_9 = arith.constant 0 : index
    %c0_10 = arith.constant 0 : index
    %18 = vector.load %arg9[%c0_9, %c0_10] : memref<2x128xf32, #tpu.memory_space<vmem>>, vector<2x128xf32>
    %cst_11 = arith.constant dense<0.000000e+00> : vector<2x49xf32>
    %19 = tpu.matmul %18, %17, %cst_11 {dimension_numbers = #tpu.dot_dimension_numbers<[1], [0], [0], [1], [0, 0, 1, 1], [], []>} : vector<2x128xf32>, vector<128x49xf32>, vector<2x49xf32> -> vector<2x49xf32>
    %cst_12 = arith.constant 33.3333321 : f32
    %20 = vector.broadcast %cst_12 : f32 to vector<2x49xf32>
    %21 = arith.mulf %19, %20 : vector<2x49xf32>
    %22 = tpu.iota {dimensions = array<i32: 0>} : vector<2x49xi32>
    %23 = vector.broadcast %arg0 : i32 to vector<2x49xi32>
    %24 = arith.cmpi eq, %22, %23 : vector<2x49xi32>
    %cst_13 = arith.constant 0.000000e+00 : f32
    %25 = vector.broadcast %cst_13 : f32 to vector<2x49xf32>
    %26 = arith.select %24, %21, %25 : vector<2x49xi1>, vector<2x49xf32>
    %cst_14 = arith.constant dense<0.000000e+00> : vector<49xf32>
    %27 = vector.multi_reduction <add>, %26, %cst_14 [0] : vector<2x49xf32> to vector<49xf32>
    %28 = vector.shape_cast %27 : vector<49xf32> to vector<1x49xf32>
    %c0_15 = arith.constant 0 : index
    %c0_16 = arith.constant 0 : index
    %c0_17 = arith.constant 0 : index
    %29 = vector.load %arg8[%c0_15, %c0_16, %c0_17] : memref<1x1x49xf32, #tpu.memory_space<vmem>>, vector<1x1x49xf32>
    %30 = vector.shape_cast %29 : vector<1x1x49xf32> to vector<1x49xf32>
    %31 = vector.shape_cast %28 : vector<1x49xf32> to vector<1x1x49xf32>
    tpu.vector_store %arg8[%c0_15, %c0_16, %c0_17], %31 {strides = array<i32>} : memref<1x1x49xf32, #tpu.memory_space<vmem>>, vector<1x1x49xf32>,
    %cst_18 = arith.constant dense<0x7F800000> : vector<1xf32>
    %32 = vector.multi_reduction <minimumf>, %28, %cst_18 [1] : vector<1x49xf32> to vector<1xf32>
    %33 = vector.shape_cast %32 : vector<1xf32> to vector<1x1xf32>
    %cst_19 = arith.constant dense<0xFF800000> : vector<1xf32>
    %34 = vector.multi_reduction <maximumf>, %28, %cst_19 [1] : vector<1x49xf32> to vector<1xf32>
    %35 = vector.shape_cast %34 : vector<1xf32> to vector<1x1xf32>
    %36 = vector.broadcast %33 : vector<1x1xf32> to vector<1x49xf32>
    %37 = arith.subf %28, %36 : vector<1x49xf32>
    %38 = arith.subf %35, %33 : vector<1x1xf32>
    %cst_20 = arith.constant 9.99999974E-6 : f32
    %39 = vector.broadcast %cst_20 : f32 to vector<1x1xf32>
    %40 = arith.addf %38, %39 : vector<1x1xf32>
    %41 = tpu.reciprocal %40 : vector<1x1xf32> -> vector<1x1xf32>
    %42 = vector.broadcast %41 : vector<1x1xf32> to vector<1x49xf32>
    %43 = arith.mulf %37, %42 : vector<1x49xf32>
    %cst_21 = arith.constant 6.000000e-01 : f32
    %44 = vector.broadcast %cst_21 : f32 to vector<1x49xf32>
    %45 = arith.cmpf ogt, %43, %44 : vector<1x49xf32>
    %46 = arith.extui %45 : vector<1x49xi1> to vector<1x49xi32>
    %47 = arith.sitofp %46 : vector<1x49xi32> to vector<1x49xf32>
    %cst_22 = arith.constant 1.000000e+00 : f32
    %48 = vector.broadcast %cst_22 : f32 to vector<1x49xf32>
    %49 = tpu.concatenate %47, %48 in 0 : vector<1x49xf32>, vector<1x49xf32> -> vector<2x49xf32>
    %cst_23 = arith.constant dense<0.000000e+00> : vector<2x128xf32>
    %50 = tpu.matmul %49, %17, %cst_23 {dimension_numbers = #tpu.dot_dimension_numbers<[1], [1], [0], [0], [0, 0, 1, 0], [], []>} : vector<2x49xf32>, vector<128x49xf32>, vector<2x128xf32> -> vector<2x128xf32>
    %cst_24 = arith.constant 0.0204081628 : f32
    %51 = vector.broadcast %cst_24 : f32 to vector<2x128xf32>
    %52 = arith.mulf %50, %51 : vector<2x128xf32>
    %53 = tpu.iota {dimensions = array<i32: 0>} : vector<2x128xi32>
    %54 = vector.broadcast %arg0 : i32 to vector<2x128xi32>
    %55 = arith.cmpi eq, %53, %54 : vector<2x128xi32>
    %56 = vector.extract_strided_slice %52 {offsets = [0, 0], sizes = [1, 128], strides = [1, 1]} : vector<2x128xf32> to vector<1x128xf32>
    %c0_25 = arith.constant 0 : index
    %c0_26 = arith.constant 0 : index
    %57 = vector.load %arg10[%c0_25, %c0_26] : memref<2x128xf32, #tpu.memory_space<vmem>>, vector<2x128xf32>
    %58 = vector.shape_cast %56 : vector<1x128xf32> to vector<1x128xf32>
    %59 = vector.broadcast %58 : vector<1x128xf32> to vector<2x128xf32>
    %60 = arith.select %55, %59, %57 : vector<2x128xi1>, vector<2x128xf32>
    %c0_27 = arith.constant 0 : index
    %c0_28 = arith.constant 0 : index
    %61 = vector.load %arg10[%c0_27, %c0_28] : memref<2x128xf32, #tpu.memory_space<vmem>>, vector<2x128xf32>
    tpu.vector_store %arg10[%c0_27, %c0_28], %60 {strides = array<i32>} : memref<2x128xf32, #tpu.memory_space<vmem>>, vector<2x128xf32>,
    %62 = vector.extract_strided_slice %52 {offsets = [1, 0], sizes = [1, 128], strides = [1, 1]} : vector<2x128xf32> to vector<1x128xf32>
    %c0_29 = arith.constant 0 : index
    %c0_30 = arith.constant 0 : index
    %63 = vector.load %arg11[%c0_29, %c0_30] : memref<2x128xf32, #tpu.memory_space<vmem>>, vector<2x128xf32>
    %64 = vector.shape_cast %62 : vector<1x128xf32> to vector<1x128xf32>
    %65 = vector.broadcast %64 : vector<1x128xf32> to vector<2x128xf32>
    %66 = arith.select %55, %65, %63 : vector<2x128xi1>, vector<2x128xf32>
    %c0_31 = arith.constant 0 : index
    %c0_32 = arith.constant 0 : index
    %67 = vector.load %arg11[%c0_31, %c0_32] : memref<2x128xf32, #tpu.memory_space<vmem>>, vector<2x128xf32>
    tpu.vector_store %arg11[%c0_31, %c0_32], %66 {strides = array<i32>} : memref<2x128xf32, #tpu.memory_space<vmem>>, vector<2x128xf32>,
    %cst_33 = arith.constant dense<0xFF800000> : vector<2xf32>
    %68 = vector.multi_reduction <maximumf>, %21, %cst_33 [1] : vector<2x49xf32> to vector<2xf32>
    %69 = vector.shape_cast %68 : vector<2xf32> to vector<2x1xf32>
    %70 = tpu.iota {dimensions = array<i32: 1>} : vector<2x2xi32>
    %71 = vector.broadcast %arg0 : i32 to vector<2x2xi32>
    %72 = arith.cmpi eq, %70, %71 : vector<2x2xi32>
    %c0_34 = arith.constant 0 : index
    %c0_35 = arith.constant 0 : index
    %73 = vector.load %arg12[%c0_34, %c0_35] : memref<2x2xf32, #tpu.memory_space<vmem>>, vector<2x2xf32>
    %74 = vector.shape_cast %69 : vector<2x1xf32> to vector<2x1xf32>
    %75 = vector.broadcast %74 : vector<2x1xf32> to vector<2x2xf32>
    %76 = arith.select %72, %75, %73 : vector<2x2xi1>, vector<2x2xf32>
    %c0_36 = arith.constant 0 : index
    %c0_37 = arith.constant 0 : index
    %77 = vector.load %arg12[%c0_36, %c0_37] : memref<2x2xf32, #tpu.memory_space<vmem>>, vector<2x2xf32>
    tpu.vector_store %arg12[%c0_36, %c0_37], %76 {strides = array<i32>} : memref<2x2xf32, #tpu.memory_space<vmem>>, vector<2x2xf32>,
    %c1_i32 = arith.constant 1 : i32
    %78 = arith.cmpi eq, %arg0, %c1_i32 : i32
    %79 = arith.extui %78 : i1 to i32
    %c0_i32_38 = arith.constant 0 : i32
    %80 = arith.cmpi ne, %79, %c0_i32_38 : i32
    scf.if %80 {
      %c0_39 = arith.constant 0 : index
      %c0_40 = arith.constant 0 : index
      %81 = vector.load %arg9[%c0_39, %c0_40] : memref<2x128xf32, #tpu.memory_space<vmem>>, vector<2x128xf32>
      %c0_41 = arith.constant 0 : index
      %c0_42 = arith.constant 0 : index
      %82 = vector.load %arg10[%c0_41, %c0_42] : memref<2x128xf32, #tpu.memory_space<vmem>>, vector<2x128xf32>
      %c0_43 = arith.constant 0 : index
      %c0_44 = arith.constant 0 : index
      %83 = vector.load %arg11[%c0_43, %c0_44] : memref<2x128xf32, #tpu.memory_space<vmem>>, vector<2x128xf32>
      %c0_45 = arith.constant 0 : index
      %c0_46 = arith.constant 0 : index
      %84 = vector.load %arg12[%c0_45, %c0_46] : memref<2x2xf32, #tpu.memory_space<vmem>>, vector<2x2xf32>
      %cst_47 = arith.constant dense<0.000000e+00> : vector<2x2xf32>
      %85 = tpu.matmul %81, %81, %cst_47 {dimension_numbers = #tpu.dot_dimension_numbers<[1], [1], [0], [0], [0, 0, 1, 0], [], []>} : vector<2x128xf32>, vector<2x128xf32>, vector<2x2xf32> -> vector<2x2xf32>
      %cst_48 = arith.constant 33.3333321 : f32
      %86 = vector.broadcast %cst_48 : f32 to vector<2x2xf32>
      %87 = arith.mulf %85, %86 : vector<2x2xf32>
      %cst_49 = arith.constant dense<0.000000e+00> : vector<2x2xf32>
      %88 = tpu.matmul %83, %83, %cst_49 {dimension_numbers = #tpu.dot_dimension_numbers<[1], [1], [0], [0], [0, 0, 1, 0], [], []>} : vector<2x128xf32>, vector<2x128xf32>, vector<2x2xf32> -> vector<2x2xf32>
      %cst_50 = arith.constant 33.3333321 : f32
      %89 = vector.broadcast %cst_50 : f32 to vector<2x2xf32>
      %90 = arith.mulf %88, %89 : vector<2x2xf32>
      %cst_51 = arith.constant dense<0.000000e+00> : vector<2x2xf32>
      %91 = tpu.matmul %82, %82, %cst_51 {dimension_numbers = #tpu.dot_dimension_numbers<[1], [1], [0], [0], [0, 0, 1, 0], [], []>} : vector<2x128xf32>, vector<2x128xf32>, vector<2x2xf32> -> vector<2x2xf32>
      %cst_52 = arith.constant 33.3333321 : f32
      %92 = vector.broadcast %cst_52 : f32 to vector<2x2xf32>
      %93 = arith.mulf %91, %92 : vector<2x2xf32>
      %94 = tpu.iota {dimensions = array<i32: 0>} : vector<2x2xi32>
      %95 = tpu.iota {dimensions = array<i32: 1>} : vector<2x2xi32>
      %96 = arith.cmpi eq, %94, %95 : vector<2x2xi32>
      %97 = arith.extui %96 : vector<2x2xi1> to vector<2x2xi32>
      %98 = arith.sitofp %97 : vector<2x2xi32> to vector<2x2xf32>
      %cst_53 = arith.constant dense<0xFF800000> : vector<2xf32>
      %99 = vector.multi_reduction <maximumf>, %84, %cst_53 [0] : vector<2x2xf32> to vector<2xf32>
      %100 = vector.shape_cast %99 : vector<2xf32> to vector<1x2xf32>
      %101 = vector.broadcast %100 : vector<1x2xf32> to vector<2x2xf32>
      %102 = arith.subf %84, %101 : vector<2x2xf32>
      %103 = math.exp %102 : vector<2x2xf32>
      %cst_54 = arith.constant dense<0.000000e+00> : vector<2xf32>
      %104 = vector.multi_reduction <add>, %103, %cst_54 [0] : vector<2x2xf32> to vector<2xf32>
      %105 = vector.shape_cast %104 : vector<2xf32> to vector<1x2xf32>
      %106 = math.log %105 : vector<1x2xf32>
      %107 = arith.addf %100, %106 : vector<1x2xf32>
      %108 = arith.mulf %84, %98 : vector<2x2xf32>
      %cst_55 = arith.constant dense<0.000000e+00> : vector<2xf32>
      %109 = vector.multi_reduction <add>, %108, %cst_55 [0] : vector<2x2xf32> to vector<2xf32>
      %110 = vector.shape_cast %109 : vector<2xf32> to vector<1x2xf32>
      %111 = arith.subf %107, %110 : vector<1x2xf32>
      %112 = vector.shape_cast %111 : vector<1x2xf32> to vector<1x1x2xf32>
      %cst_56 = arith.constant dense<0.000000e+00> : vector<1xf32>
      %113 = vector.multi_reduction <add>, %112, %cst_56 [1, 2] : vector<1x1x2xf32> to vector<1xf32>
      %114 = vector.shape_cast %113 : vector<1xf32> to vector<1x1x1xf32>
      %115 = vector.extract %114[0, 0, 0] : f32 from vector<1x1x1xf32>
      %116 = vector.broadcast %115 : f32 to vector<1x1xf32>
      %cst_57 = arith.constant 5.000000e-01 : f32
      %117 = vector.broadcast %cst_57 : f32 to vector<1x1xf32>
      %118 = arith.mulf %116, %117 : vector<1x1xf32>
      %cst_58 = arith.constant dense<0xFF800000> : vector<2xf32>
      %119 = vector.multi_reduction <maximumf>, %84, %cst_58 [1] : vector<2x2xf32> to vector<2xf32>
      %120 = vector.shape_cast %119 : vector<2xf32> to vector<2x1xf32>
      %121 = vector.broadcast %120 : vector<2x1xf32> to vector<2x2xf32>
      %122 = arith.subf %84, %121 : vector<2x2xf32>
      %123 = math.exp %122 : vector<2x2xf32>
      %cst_59 = arith.constant dense<0.000000e+00> : vector<2xf32>
      %124 = vector.multi_reduction <add>, %123, %cst_59 [1] : vector<2x2xf32> to vector<2xf32>
      %125 = vector.shape_cast %124 : vector<2xf32> to vector<2x1xf32>
      %126 = math.log %125 : vector<2x1xf32>
      %127 = arith.addf %120, %126 : vector<2x1xf32>
      %128 = arith.mulf %84, %98 : vector<2x2xf32>
      %cst_60 = arith.constant dense<0.000000e+00> : vector<2xf32>
      %129 = vector.multi_reduction <add>, %128, %cst_60 [1] : vector<2x2xf32> to vector<2xf32>
      %130 = vector.shape_cast %129 : vector<2xf32> to vector<2x1xf32>
      %131 = arith.subf %127, %130 : vector<2x1xf32>
      %132 = vector.shape_cast %131 : vector<2x1xf32> to vector<1x2x1xf32>
      %cst_61 = arith.constant dense<0.000000e+00> : vector<1xf32>
      %133 = vector.multi_reduction <add>, %132, %cst_61 [1, 2] : vector<1x2x1xf32> to vector<1xf32>
      %134 = vector.shape_cast %133 : vector<1xf32> to vector<1x1x1xf32>
      %135 = vector.extract %134[0, 0, 0] : f32 from vector<1x1x1xf32>
      %136 = vector.broadcast %135 : f32 to vector<1x1xf32>
      %cst_62 = arith.constant 5.000000e-01 : f32
      %137 = vector.broadcast %cst_62 : f32 to vector<1x1xf32>
      %138 = arith.mulf %136, %137 : vector<1x1xf32>
      %139 = arith.addf %118, %138 : vector<1x1xf32>
      %cst_63 = arith.constant dense<0xFF800000> : vector<2xf32>
      %140 = vector.multi_reduction <maximumf>, %87, %cst_63 [0] : vector<2x2xf32> to vector<2xf32>
      %141 = vector.shape_cast %140 : vector<2xf32> to vector<1x2xf32>
      %142 = vector.broadcast %141 : vector<1x2xf32> to vector<2x2xf32>
      %143 = arith.subf %87, %142 : vector<2x2xf32>
      %144 = math.exp %143 : vector<2x2xf32>
      %cst_64 = arith.constant dense<0.000000e+00> : vector<2xf32>
      %145 = vector.multi_reduction <add>, %144, %cst_64 [0] : vector<2x2xf32> to vector<2xf32>
      %146 = vector.shape_cast %145 : vector<2xf32> to vector<1x2xf32>
      %147 = tpu.reciprocal %146 {approx = true} : vector<1x2xf32> -> vector<1x2xf32>
      %148 = vector.broadcast %147 : vector<1x2xf32> to vector<2x2xf32>
      %149 = arith.mulf %144, %148 : vector<2x2xf32>
      %cst_65 = arith.constant dense<0xFF800000> : vector<2xf32>
      %150 = vector.multi_reduction <maximumf>, %84, %cst_65 [0] : vector<2x2xf32> to vector<2xf32>
      %151 = vector.shape_cast %150 : vector<2xf32> to vector<1x2xf32>
      %152 = vector.broadcast %151 : vector<1x2xf32> to vector<2x2xf32>
      %153 = arith.subf %84, %152 : vector<2x2xf32>
      %154 = math.exp %153 : vector<2x2xf32>
      %cst_66 = arith.constant dense<0.000000e+00> : vector<2xf32>
      %155 = vector.multi_reduction <add>, %154, %cst_66 [0] : vector<2x2xf32> to vector<2xf32>
      %156 = vector.shape_cast %155 : vector<2xf32> to vector<1x2xf32>
      %157 = tpu.reciprocal %156 {approx = true} : vector<1x2xf32> -> vector<1x2xf32>
      %158 = vector.broadcast %157 : vector<1x2xf32> to vector<2x2xf32>
      %159 = arith.mulf %154, %158 : vector<2x2xf32>
      %cst_67 = arith.constant dense<0xFF800000> : vector<2xf32>
      %160 = vector.multi_reduction <maximumf>, %93, %cst_67 [0] : vector<2x2xf32> to vector<2xf32>
      %161 = vector.shape_cast %160 : vector<2xf32> to vector<1x2xf32>
      %162 = vector.broadcast %161 : vector<1x2xf32> to vector<2x2xf32>
      %163 = arith.subf %93, %162 : vector<2x2xf32>
      %164 = math.exp %163 : vector<2x2xf32>
      %cst_68 = arith.constant dense<0.000000e+00> : vector<2xf32>
      %165 = vector.multi_reduction <add>, %164, %cst_68 [0] : vector<2x2xf32> to vector<2xf32>
      %166 = vector.shape_cast %165 : vector<2xf32> to vector<1x2xf32>
      %167 = tpu.reciprocal %166 {approx = true} : vector<1x2xf32> -> vector<1x2xf32>
      %168 = vector.broadcast %167 : vector<1x2xf32> to vector<2x2xf32>
      %169 = arith.mulf %164, %168 : vector<2x2xf32>
      %cst_69 = arith.constant dense<0xFF800000> : vector<2xf32>
      %170 = vector.multi_reduction <maximumf>, %90, %cst_69 [0] : vector<2x2xf32> to vector<2xf32>
      %171 = vector.shape_cast %170 : vector<2xf32> to vector<1x2xf32>
      %172 = vector.broadcast %171 : vector<1x2xf32> to vector<2x2xf32>
      %173 = arith.subf %90, %172 : vector<2x2xf32>
      %174 = math.exp %173 : vector<2x2xf32>
      %cst_70 = arith.constant dense<0.000000e+00> : vector<2xf32>
      %175 = vector.multi_reduction <add>, %174, %cst_70 [0] : vector<2x2xf32> to vector<2xf32>
      %176 = vector.shape_cast %175 : vector<2xf32> to vector<1x2xf32>
      %177 = tpu.reciprocal %176 {approx = true} : vector<1x2xf32> -> vector<1x2xf32>
      %178 = vector.broadcast %177 : vector<1x2xf32> to vector<2x2xf32>
      %179 = arith.mulf %174, %178 : vector<2x2xf32>
      %180 = arith.subf %149, %159 : vector<2x2xf32>
      %181 = math.absf %180 : vector<2x2xf32>
      %182 = vector.shape_cast %181 : vector<2x2xf32> to vector<1x2x2xf32>
      %cst_71 = arith.constant dense<0.000000e+00> : vector<1xf32>
      %183 = vector.multi_reduction <add>, %182, %cst_71 [1, 2] : vector<1x2x2xf32> to vector<1xf32>
      %184 = vector.shape_cast %183 : vector<1xf32> to vector<1x1x1xf32>
      %185 = vector.extract %184[0, 0, 0] : f32 from vector<1x1x1xf32>
      %186 = vector.broadcast %185 : f32 to vector<1x1xf32>
      %cst_72 = arith.constant 2.500000e-01 : f32
      %187 = vector.broadcast %cst_72 : f32 to vector<1x1xf32>
      %188 = arith.mulf %186, %187 : vector<1x1xf32>
      %189 = arith.subf %149, %169 : vector<2x2xf32>
      %190 = math.absf %189 : vector<2x2xf32>
      %191 = vector.shape_cast %190 : vector<2x2xf32> to vector<1x2x2xf32>
      %cst_73 = arith.constant dense<0.000000e+00> : vector<1xf32>
      %192 = vector.multi_reduction <add>, %191, %cst_73 [1, 2] : vector<1x2x2xf32> to vector<1xf32>
      %193 = vector.shape_cast %192 : vector<1xf32> to vector<1x1x1xf32>
      %194 = vector.extract %193[0, 0, 0] : f32 from vector<1x1x1xf32>
      %195 = vector.broadcast %194 : f32 to vector<1x1xf32>
      %cst_74 = arith.constant 2.500000e-01 : f32
      %196 = vector.broadcast %cst_74 : f32 to vector<1x1xf32>
      %197 = arith.mulf %195, %196 : vector<1x1xf32>
      %198 = arith.subf %179, %159 : vector<2x2xf32>
      %199 = math.absf %198 : vector<2x2xf32>
      %200 = vector.shape_cast %199 : vector<2x2xf32> to vector<1x2x2xf32>
      %cst_75 = arith.constant dense<0.000000e+00> : vector<1xf32>
      %201 = vector.multi_reduction <add>, %200, %cst_75 [1, 2] : vector<1x2x2xf32> to vector<1xf32>
      %202 = vector.shape_cast %201 : vector<1xf32> to vector<1x1x1xf32>
      %203 = vector.extract %202[0, 0, 0] : f32 from vector<1x1x1xf32>
      %204 = vector.broadcast %203 : f32 to vector<1x1xf32>
      %cst_76 = arith.constant 2.500000e-01 : f32
      %205 = vector.broadcast %cst_76 : f32 to vector<1x1xf32>
      %206 = arith.mulf %204, %205 : vector<1x1xf32>
      %207 = tpu.concatenate %139, %188, %197, %206 in 1 : vector<1x1xf32>, vector<1x1xf32>, vector<1x1xf32>, vector<1x1xf32> -> vector<1x4xf32>
      %c0_77 = arith.constant 0 : index
      %c0_78 = arith.constant 0 : index
      %208 = vector.load %arg7[%c0_77, %c0_78] : memref<1x4xf32, #tpu.memory_space<vmem>>, vector<1x4xf32>
      tpu.vector_store %arg7[%c0_77, %c0_78], %207 {strides = array<i32>} : memref<1x4xf32, #tpu.memory_space<vmem>>, vector<1x4xf32>,
    } else {
    }
    return
  }
  func.func @transform_0(%arg0: i32) -> (i32, i32, i32) {
    %c0_i32 = arith.constant 0 : i32
    %c0_i32_0 = arith.constant 0 : i32
    %c0_i32_1 = arith.constant 0 : i32
    return %arg0, %c0_i32, %c0_i32_0 : i32, i32, i32
  }
  func.func @transform_1(%arg0: i32) -> (i32, i32) {
    %c0_i32 = arith.constant 0 : i32
    %c0_i32_0 = arith.constant 0 : i32
    %c0_i32_1 = arith.constant 0 : i32
    return %c0_i32, %c0_i32_0 : i32, i32
  }
  func.func @transform_2(%arg0: i32) -> (i32, i32) {
    %c0_i32 = arith.constant 0 : i32
    %c0_i32_0 = arith.constant 0 : i32
    %c0_i32_1 = arith.constant 0 : i32
    return %c0_i32, %c0_i32_0 : i32, i32
  }
  func.func @transform_3(%arg0: i32) -> (i32, i32) {
    %c0_i32 = arith.constant 0 : i32
    %c0_i32_0 = arith.constant 0 : i32
    %c0_i32_1 = arith.constant 0 : i32
    return %c0_i32, %c0_i32_0 : i32, i32
  }
  func.func @transform_4(%arg0: i32) -> (i32, i32) {
    %c0_i32 = arith.constant 0 : i32
    %c0_i32_0 = arith.constant 0 : i32
    %c0_i32_1 = arith.constant 0 : i32
    return %c0_i32, %c0_i32_0 : i32, i32
  }
  func.func @transform_5(%arg0: i32) -> (i32, i32) {
    %c0_i32 = arith.constant 0 : i32
    %c0_i32_0 = arith.constant 0 : i32
    %c0_i32_1 = arith.constant 0 : i32
    return %c0_i32, %c0_i32_0 : i32, i32
  }
  func.func @transform_6(%arg0: i32) -> (i32, i32) {
    %c0_i32 = arith.constant 0 : i32
    %c0_i32_0 = arith.constant 0 : i32
    %c0_i32_1 = arith.constant 0 : i32
    return %c0_i32, %c0_i32_0 : i32, i32
  }
  func.func @transform_7(%arg0: i32) -> (i32, i32, i32) {
    %c0_i32 = arith.constant 0 : i32
    %c0_i32_0 = arith.constant 0 : i32
    %c0_i32_1 = arith.constant 0 : i32
    return %arg0, %c0_i32, %c0_i32_0 : i32, i32, i32
  }
}

</mosaic_0001>

<bundles_post_ra>
// kernel: fnac_head_pallas.1
= control target key start
LH: loop header
LB: loop body
LE: loop exit
PB: predicated region body
PF: predicated region fallthrough
CT: control target
= control target key end

     0   :  { %13 = vsyncpa [#allocation7], 0  ;;  %s2884_s24 = smov 0   ;;  %s3384_s0 = inlined_call_operand.vmem [shape: bf16[2,512,49], index: 0, kind: input, shape index: {}]   ;;  %s3385_s1 = inlined_call_operand.vmem [shape: bf16[2,512], index: 1, kind: input, shape index: {}]   ;;  %s3386_s2 = inlined_call_operand.vmem [shape: bf16[128,512], index: 2, kind: input, shape index: {}]   ;;  %s3387_s3 = inlined_call_operand.vmem [shape: f32[128,1], index: 3, kind: input, shape index: {}]   ;;  %s3388_s4 = inlined_call_operand.vmem [shape: bf16[512,128], index: 4, kind: input, shape index: {}]   ;;  %s3389_s5 = inlined_call_operand.vmem [shape: f32[1,128], index: 5, kind: input, shape index: {}]   ;;  %s3390_s6 = inlined_call_operand.hbm [shape: f32[1,4], index: 6, kind: output, shape index: {0}]   ;;  %s3391_s7 = inlined_call_operand.vmem [shape: f32[2,1,49], index: 7, kind: output, shape index: {1}]  }
   0x1 LB: > { %s2890_s25 = sadd.s32 4294967295, %s2834_s24   ;;  %p2202_p0 = scmp.ge.s32.totalorder %s2834_s24, 1  ;;  %s2834_s24 = sphi %s2884_s24, %s19_s24  }
   0x2   : > { %p236_p1 = scmp.lt.s32.totalorder %s2834_s24, 3 }
   0x4   : > { %p237_p2 = pnand %p2202_p0, %p236_p1 }
   0x5   : > { %p266_p3 = scmp.lt.s32.totalorder (!%p237_p2), %s2890_s25, 1  ;;  %p2205_p4 = scmp.ne.s32.totalorder (!%p237_p2), %s2890_s25, 0 }
   0x6   : > { %240 = sbr.rel (%p237_p2) target bundleno = 1886 (0x75e), region = 44 }
   0xb   : > { %s2896_s26 = scalar_select %p266_p3, %s2890_s25, 1 }
   0xc   : > { %278 = sbr.rel (%p2205_p4) target bundleno = 412 (0x19c), region = 48 }
   0xd   : > { %s2328_s27 = sshll.u32 %s2896_s26, 8  ;;  %s273_s30 = scalar_lea.vmem %s3391_s7, %s2896_s26 }
   0xe   : > { %s2906_s10 = scalar_lea.vmem %s3384_s0, %s2328_s27 }
  0x11   : > { %v2658_v0 = vld [vmem:[%s3388_s4 + $0x78] sm:$0xff]   ;;  %v2662_v4 = vld [vmem:[%s3388_s4 + $0x70] sm:$0xff]   ;;  %v2666_v8 = vld [vmem:[%s3388_s4 + $0x68] sm:$0xff]   ;;  %v363_v30 = vlaneseq  ;;  %v2836_v34 = vmov 1966171168   ;;  %vm653_vm0 = vcmask 1041408  }
  0x12   : > { %v2659_v1 = vld [vmem:[%s3388_s4 + $0xf8] sm:$0xff]   ;;  %2329 = vmatprep.subr.bf16.mxu0 %v2658_v0  ;;  %v2663_v5 = vld [vmem:[%s3388_s4 + $0xf0] sm:$0xff]   ;;  %v2667_v9 = vld [vmem:[%s3388_s4 + $0xe8] sm:$0xff]   ;;  %v361_v35 = vunpack.c.l.s4 %v2836_v34  ;;  %vm663_vm1 = vcmask 9216   ;;  %v2837_v59 = vmov 0.0  }
  0x13   : > { %v2660_v2 = vld [vmem:[%s3388_s4 + $0x38] sm:$0xff]   ;;  %2351 = vmatprep.subr.bf16.mxu1 %v2659_v1  ;;  %v2664_v6 = vld [vmem:[%s3388_s4 + $0x30] sm:$0xff]   ;;  %v2668_v10 = vld [vmem:[%s3388_s4 + $0x28] sm:$0xff]   ;;  %v364_v36 = vshrl.u32 %v363_v30, 7  ;;  %661 = vst [vmem:[#allocation3] sm:$0x3] %v2837_v59 }
  0x14   : > { %v2661_v3 = vld [vmem:[%s3388_s4 + $0xb8] sm:$0xff]   ;;  %2330 = vmatpush3.bf16.msra.mxu0 %v2660_v2  ;;  %v2665_v7 = vld [vmem:[%s3388_s4 + $0xb0] sm:$0xff]   ;;  %v2669_v11 = vld [vmem:[%s3388_s4 + $0xa8] sm:$0xff]   ;;  %v362_v38 = vunpack.c.0.s8 %v361_v35  ;;  %662 = vst [vmem:[#allocation4] sm:$0x3] %v2837_v59 }
  0x15   : > { %2352 = vmatpush3.bf16.msra.mxu1 %v2661_v3  ;;  %2331 = vmatprep.subr.bf16.mxu0 %v2662_v4  ;;  %v2670_v12 = vld [vmem:[%s3388_s4 + $0x60] sm:$0xff]   ;;  %v2674_v16 = vld [vmem:[%s3388_s4 + $0x58] sm:$0xff]   ;;  %v2678_v20 = vld [vmem:[%s3388_s4 + $0x50] sm:$0xff]   ;;  %664 = vst.msk [vmem:[#allocation5] sm:$0x3] %vm663_vm1, %v2837_v59 }
  0x16   : > { %2353 = vmatprep.subr.bf16.mxu1 %v2663_v5  ;;  %v2671_v13 = vld [vmem:[%s3388_s4 + $0xe0] sm:$0xff]   ;;  %v2675_v17 = vld [vmem:[%s3388_s4 + $0xd8] sm:$0xff]   ;;  %v2679_v21 = vld [vmem:[%s3388_s4 + $0xd0] sm:$0xff]   ;;  %v365_v39 = vsub.s32 %v362_v38, %v364_v36 }
  0x17   : > { %v2672_v14 = vld [vmem:[%s3388_s4 + $0x20] sm:$0xff]   ;;  %v2676_v18 = vld [vmem:[%s3388_s4 + $0x18] sm:$0xff]   ;;  %v2680_v22 = vld [vmem:[%s3388_s4 + $0x10] sm:$0xff]  }
  0x18   : > { %2332 = vmatpush3.bf16.msra.mxu0 %v2664_v6  ;;  %v2673_v15 = vld [vmem:[%s3388_s4 + $0xa0] sm:$0xff]   ;;  %v2677_v19 = vld [vmem:[%s3388_s4 + $0x98] sm:$0xff]   ;;  %v2681_v23 = vld [vmem:[%s3388_s4 + $0x90] sm:$0xff]  }
  0x19   : > { %2354 = vmatpush3.bf16.msra.mxu1 %v2665_v7  ;;  %2333 = vmatprep.subr.bf16.mxu0 %v2666_v8  ;;  %v2682_v24 = vld [vmem:[%s3388_s4 + $0x48] sm:$0xff]   ;;  %v2686_v28 = vld [vmem:[%s3388_s4 + $0x40] sm:$0xff]  }
  0x1a   : > { %2355 = vmatprep.subr.bf16.mxu1 %v2667_v9  ;;  %v2683_v25 = vld [vmem:[%s3388_s4 + $0xc8] sm:$0xff]   ;;  %v2687_v29 = vld [vmem:[%s3388_s4 + $0xc0] sm:$0xff]  }
  0x1b   : > { %v2684_v26 = vld [vmem:[%s3388_s4 + $0x8] sm:$0xff]   ;;  %v2688_v31 = vld [vmem:[%s3388_s4] sm:$0xff]  }
  0x1c   : > { %2334 = vmatpush3.bf16.msra.mxu0 %v2668_v10  ;;  %v2685_v27 = vld [vmem:[%s3388_s4 + $0x88] sm:$0xff]   ;;  %v2689_v32 = vld [vmem:[%s3388_s4 + $0x80] sm:$0xff]  }
  0x1d   : > { %2356 = vmatpush3.bf16.msra.mxu1 %v2669_v11  ;;  %2335 = vmatprep.subr.bf16.mxu0 %v2670_v12  ;;  %v2207_v33 = vld.sshfl [vmem:[%s3385_s1] sm:$0x33 pattern:$0x75316420] }
  0x1e   : > { %2357 = vmatprep.subr.bf16.mxu1 %v2671_v13  ;;  %v359_v37 = vcombine.high %v2207_v33, %v2207_v33  ;;  %v366_v41 = vrot.slane %v2207_v33, %v365_v39  ;;  %v2206_v46 = vld [vmem:[%s3389_s5] ss:$0 sm:$0xff] }
  0x20   : > { %2336 = vmatpush3.bf16.msra.mxu0 %v2672_v14  ;;  %v373_v40 = vrot.slane %v359_v37, %v365_v39  ;;  %v374_v43 = vcombine.high %v366_v41, %v366_v41 }
  0x21   : > { %2358 = vmatpush3.bf16.msra.mxu1 %v2673_v15  ;;  %2337 = vmatprep.subr.bf16.mxu0 %v2674_v16 }
  0x22   : > { %2359 = vmatprep.subr.bf16.mxu1 %v2675_v17  ;;  %604 = vmatprep.mubr.bf16.mxu0 %v373_v40  ;;  %v375_v42 = vcombine.high %v373_v40, %v373_v40 }
  0x24   : > { %2338 = vmatpush3.bf16.msra.mxu0 %v2676_v18  ;;  %644 = vmatprep.mubr.bf16.mxu1 %v375_v42 }
  0x25   : > { %2360 = vmatpush3.bf16.msra.mxu1 %v2677_v19  ;;  %2339 = vmatprep.subr.bf16.mxu0 %v2678_v20 }
  0x26   : > { %2361 = vmatprep.subr.bf16.mxu1 %v2679_v21 }
  0x28   : > { %2340 = vmatpush3.bf16.msra.mxu0 %v2680_v22 }
  0x29   : > { %2362 = vmatpush3.bf16.msra.mxu1 %v2681_v23  ;;  %2341 = vmatprep.subr.bf16.mxu0 %v2682_v24 }
  0x2a   : > { %2363 = vmatprep.subr.bf16.mxu1 %v2683_v25 }
  0x2c   : > { %2342 = vmatpush3.bf16.msra.mxu0 %v2684_v26 }
  0x2d   : > { %2364 = vmatpush3.bf16.msra.mxu1 %v2685_v27  ;;  %2343 = vmatprep.subr.bf16.mxu0 %v2686_v28 }
  0x2e   : > { %2365 = vmatprep.subr.bf16.mxu1 %v2687_v29 }
  0x30   : > { %2344 = vmatpush3.bf16.msra.mxu0 %v2688_v31 }
  0x31   : > { %2366 = vmatpush3.bf16.msra.mxu1 %v2689_v32 }
  0x33   : > { %605 = vmatmul.mubr.bf16.vlgmr.msra.gmra.mxu0 %v366_v41 }
  0x34   : > { %645 = vmatmul.mubr.bf16.vlgmr.msra.gmra.mxu1 %v374_v43 }
  0xf3   : > { %v2345_v44 = vpop.f32.mrf.mxu0 }
  0xf4   : > { %v2367_v45 = vpop.f32.mrf.mxu1 }
  0xf5   : > { %v2346_v47 = vpop.f32.mrf.mxu0 }
  0xf6   : > { %v2347_v48 = vadd.f32 %v2346_v47, %v2345_v44  ;;  %v2368_v49 = vpop.f32.mrf.mxu1 }
  0xf7   : > { %v2348_v50 = vpop.f32.mrf.mxu0  ;;  %v2369_v52 = vadd.f32 %v2368_v49, %v2367_v45 }
  0xf8   : > { %v607_v51 = vadd.f32 %v2347_v48, %v2206_v46  ;;  %v2370_v53 = vpop.f32.mrf.mxu1 }
  0xf9   : > { %v2349_v54 = vpop.f32.mrf.mxu0 }
  0xfa   : > { %v647_v55 = vadd.f32 %v2369_v52, %v607_v51  ;;  %v2371_v56 = vpop.f32.mrf.mxu1 }
  0xfc   : > { %v652_v57 = vmul.f32 %v647_v55, %v647_v55 }
  0xfe   : > { %v654_v58 = vsel %vm653_vm0, %v652_v57, 0.0 }
  0xff   : > { %655 = vadd.xlane.f32.xlu0 %v654_v58 }
 0x188   : > { %v656_v60 = vpop.xlane.xlu0 %655 }
 0x189   : > { %v657_v61 = vmax.f32 %v656_v60, 1e-24 }
 0x18b   : > { %2690 = vrsqrt.f32 %v657_v61 }
 0x198   : > { %v2691_v62 = vpop.eup %2690 }
 0x199   : > { %v659_v63 = vmul.f32 %v2691_v62, %v647_v55 }
 0x19b   : > { %660 = vst [vmem:[#allocation2] sm:$0x3] %v659_v63 }
 0x19c PF: > { %v2694_v0 = vld [vmem:[%s2906_s10 + $0x78] sm:$0xff]   ;;  %v2838_v2 = vmov 0   ;;  %v2698_v5 = vld [vmem:[%s2906_s10 + $0x70] sm:$0xff]   ;;  %v2702_v9 = vld [vmem:[%s2906_s10 + $0x68] sm:$0xff]   ;;  %vm2840_vm2 = vmmov 0   ;;  %vm1419_vm3 = vcmask 400384  }
 0x19d   : > { %v2695_v1 = vld [vmem:[%s2906_s10 + $0xf8] sm:$0xff]   ;;  %2692 = vset.pattern.permute.xlu0 %v2838_v2  ;;  %2693 = vset.pattern.permute.xlu1 %v2838_v2  ;;  %v2699_v6 = vld [vmem:[%s2906_s10 + $0xf0] sm:$0xff]   ;;  %v2703_v10 = vld [vmem:[%s2906_s10 + $0xe8] sm:$0xff]   ;;  %vm1552_vm5 = vcmask 394240   ;;  %vm1560_vm6 = vcmask 393216   ;;  %vm1722_vm8 = vcmask 9216  }
 0x19e   : > { %2373 = vmatprep.subr.bf16.mxu0 %v2694_v0  ;;  %v2696_v3 = vld [vmem:[%s2906_s10 + $0x38] sm:$0xff]   ;;  %2437 = vmatprep.subr.bf16.mxu1 %v2695_v1  ;;  %v2700_v7 = vld [vmem:[%s2906_s10 + $0x30] sm:$0xff]   ;;  %v2704_v11 = vld [vmem:[%s2906_s10 + $0x28] sm:$0xff]   ;;  %vm1576_vm9 = vcmask 1040384   ;;  %p2322_p5 = scmp.ne.s32.totalorder %s2890_s25, 1 }
 0x19f   : > { %v2697_v4 = vld [vmem:[%s2906_s10 + $0xb8] sm:$0xff]   ;;  %2374 = vmatpush3.bf16.msra.mxu0 %v2696_v3  ;;  %v2701_v8 = vld [vmem:[%s2906_s10 + $0xb0] sm:$0xff]   ;;  %v2705_v12 = vld [vmem:[%s2906_s10 + $0xa8] sm:$0xff]  }
 0x1a0   : > { %2438 = vmatpush3.bf16.msra.mxu1 %v2697_v4  ;;  %2375 = vmatprep.subr.bf16.mxu0 %v2698_v5  ;;  %v2706_v13 = vld [vmem:[%s2906_s10 + $0x60] sm:$0xff]   ;;  %v2710_v17 = vld [vmem:[%s2906_s10 + $0x58] sm:$0xff]   ;;  %v2714_v21 = vld [vmem:[%s2906_s10 + $0x50] sm:$0xff]  }
 0x1a1   : > { %2439 = vmatprep.subr.bf16.mxu1 %v2699_v6  ;;  %v2707_v14 = vld [vmem:[%s2906_s10 + $0xe0] sm:$0xff]   ;;  %v2711_v18 = vld [vmem:[%s2906_s10 + $0xd8] sm:$0xff]   ;;  %v2715_v22 = vld [vmem:[%s2906_s10 + $0xd0] sm:$0xff]  }
 0x1a2   : > { %v2708_v15 = vld [vmem:[%s2906_s10 + $0x20] sm:$0xff]   ;;  %v2712_v19 = vld [vmem:[%s2906_s10 + $0x18] sm:$0xff]   ;;  %v2716_v23 = vld [vmem:[%s2906_s10 + $0x10] sm:$0xff]  }
 0x1a3   : > { %2376 = vmatpush3.bf16.msra.mxu0 %v2700_v7  ;;  %v2709_v16 = vld [vmem:[%s2906_s10 + $0xa0] sm:$0xff]   ;;  %v2713_v20 = vld [vmem:[%s2906_s10 + $0x98] sm:$0xff]   ;;  %v2717_v24 = vld [vmem:[%s2906_s10 + $0x90] sm:$0xff]  }
 0x1a4   : > { %2440 = vmatpush3.bf16.msra.mxu1 %v2701_v8  ;;  %2377 = vmatprep.subr.bf16.mxu0 %v2702_v9  ;;  %v2718_v25 = vld [vmem:[%s2906_s10 + $0x48] sm:$0xff]   ;;  %v2722_v29 = vld [vmem:[%s2906_s10 + $0x40] sm:$0xff]   ;;  %v763_v48 = vld [vmem:[%s3387_s3 + $0x10] sm:$0xff] }
 0x1a5   : > { %2441 = vmatprep.subr.bf16.mxu1 %v2703_v10  ;;  %v2719_v26 = vld [vmem:[%s2906_s10 + $0xc8] sm:$0xff]   ;;  %v2723_v30 = vld [vmem:[%s2906_s10 + $0xc0] sm:$0xff]   ;;  %789 = vperm.xlu1 %2693, %v763_v48   ;;  %v764_v51 = vld [vmem:[%s3387_s3 + $0x18] sm:$0xff] }
 0x1a6   : > { %v2720_v27 = vld [vmem:[%s2906_s10 + $0x8] sm:$0xff]   ;;  %v2724_v31 = vld [vmem:[%s2906_s10] sm:$0xff]   ;;  %v767_v57 = vld [vmem:[%s3387_s3 + $0x30] sm:$0xff] }
 0x1a7   : > { %2378 = vmatpush3.bf16.msra.mxu0 %v2704_v11  ;;  %v2721_v28 = vld [vmem:[%s2906_s10 + $0x88] sm:$0xff]   ;;  %v2725_v32 = vld [vmem:[%s2906_s10 + $0x80] sm:$0xff]   ;;  %v768_v59 = vld [vmem:[%s3387_s3 + $0x38] sm:$0xff] }
 0x1a8   : > { %2442 = vmatpush3.bf16.msra.mxu1 %v2705_v12  ;;  %2379 = vmatprep.subr.bf16.mxu0 %v2706_v13  ;;  %v2726_v33 = vld [vmem:[%s3386_s2] ss:$16 sps:$4 sm:$0xff]   ;;  %v2728_v34 = vld [vmem:[%s3386_s2 + $0x4] ss:$16 sps:$4 sm:$0xff]   ;;  %v2729_v35 = vld [vmem:[%s3386_s2 + $0x8] ss:$16 sps:$4 sm:$0xff]  }
 0x1a9   : > { %2443 = vmatprep.subr.bf16.mxu1 %v2707_v14  ;;  %v2731_v36 = vld [vmem:[%s3386_s2 + $0xc] ss:$16 sps:$4 sm:$0xff]   ;;  %1241 = vmatprep.mubr.bf16.mxu0 %v2728_v34  ;;  %v2732_v37 = vld [vmem:[%s3386_s2 + $0x24] ss:$16 sps:$4 sm:$0xff]   ;;  %v2736_v39 = vld [vmem:[%s3386_s2 + $0x20] ss:$16 sps:$4 sm:$0xff]  }
 0x1aa   : > { %1338 = vmatprep.mubr.bf16.mxu1 %v2731_v36  ;;  %v2734_v38 = vld [vmem:[%s3386_s2 + $0x2c] ss:$16 sps:$4 sm:$0xff]   ;;  %v2737_v40 = vld [vmem:[%s3386_s2 + $0x28] ss:$16 sps:$4 sm:$0xff]   ;;  %v2738_v41 = vld [vmem:[%s3386_s2 + $0x44] ss:$16 sps:$4 sm:$0xff]   ;;  %794 = vperm.xlu1 %2693, %v764_v51  }
 0x1ab   : > { %2380 = vmatpush3.bf16.msra.mxu0 %v2708_v15  ;;  %v2740_v42 = vld [vmem:[%s3386_s2 + $0x4c] ss:$16 sps:$4 sm:$0xff]   ;;  %v2742_v43 = vld [vmem:[%s3386_s2 + $0x40] ss:$16 sps:$4 sm:$0xff]   ;;  %v2743_v44 = vld [vmem:[%s3386_s2 + $0x48] ss:$16 sps:$4 sm:$0xff]  }
 0x1ac   : > { %2444 = vmatpush3.bf16.msra.mxu1 %v2709_v16  ;;  %2381 = vmatprep.subr.bf16.mxu0 %v2710_v17  ;;  %v2744_v45 = vld [vmem:[%s3386_s2 + $0x64] ss:$16 sps:$4 sm:$0xff]   ;;  %v2746_v46 = vld [vmem:[%s3386_s2 + $0x6c] ss:$16 sps:$4 sm:$0xff]   ;;  %v2748_v50 = vld [vmem:[%s3386_s2 + $0x60] ss:$16 sps:$4 sm:$0xff]  }
 0x1ad   : > { %2445 = vmatprep.subr.bf16.mxu1 %v2711_v18  ;;  %v761_v47 = vld [vmem:[%s3387_s3] sm:$0xff]  ;;  %v762_v49 = vld [vmem:[%s3387_s3 + $0x8] sm:$0xff]  ;;  %v771_v1 = vld [vmem:[%s3387_s3 + $0x50] sm:$0xff]  ;;  %v2839_v17 = vmov 0.0  }
 0x1ae   : > { %779 = vperm.xlu0 %2692, %v761_v47   ;;  %v2749_v52 = vld [vmem:[%s3386_s2 + $0x68] ss:$16 sps:$4 sm:$0xff]   ;;  %v2750_v53 = vld [vmem:[%s3386_s2 + $0x84] ss:$16 sps:$4 sm:$0xff]   ;;  %v2752_v54 = vld [vmem:[%s3386_s2 + $0x8c] ss:$16 sps:$4 sm:$0xff]  }
 0x1af   : > { %2382 = vmatpush3.bf16.msra.mxu0 %v2712_v19  ;;  %v765_v55 = vld [vmem:[%s3387_s3 + $0x20] sm:$0xff]  ;;  %v766_v56 = vld [vmem:[%s3387_s3 + $0x28] sm:$0xff]  ;;  %v772_v3 = vld [vmem:[%s3387_s3 + $0x58] sm:$0xff] }
 0x1b0   : > { %2446 = vmatpush3.bf16.msra.mxu1 %v2713_v20  ;;  %2383 = vmatprep.subr.bf16.mxu0 %v2714_v21  ;;  %v2754_v58 = vld [vmem:[%s3386_s2 + $0x80] ss:$16 sps:$4 sm:$0xff]   ;;  %v2755_v60 = vld [vmem:[%s3386_s2 + $0x88] ss:$16 sps:$4 sm:$0xff]   ;;  %v2756_v61 = vld [vmem:[%s3386_s2 + $0xa4] ss:$16 sps:$4 sm:$0xff]  }
 0x1b1   : > { %2447 = vmatprep.subr.bf16.mxu1 %v2715_v22  ;;  %804 = vperm.xlu1 %2693, %v766_v56   ;;  %v2758_v62 = vld [vmem:[%s3386_s2 + $0xac] ss:$16 sps:$4 sm:$0xff]   ;;  %v769_v63 = vld [vmem:[%s3387_s3 + $0x40] sm:$0xff]  ;;  %v2761_v4 = vld [vmem:[%s3386_s2 + $0xa8] ss:$16 sps:$4 sm:$0xff]  }
 0x1b2   : > { %784 = vperm.xlu0 %2692, %v762_v49   ;;  %v770_v0 = vld [vmem:[%s3387_s3 + $0x48] sm:$0xff]  ;;  %v2760_v2 = vld [vmem:[%s3386_s2 + $0xa0] ss:$16 sps:$4 sm:$0xff]   ;;  %v2762_v5 = vld [vmem:[%s3386_s2 + $0xc4] ss:$16 sps:$4 sm:$0xff]  }
 0x1b3   : > { %2384 = vmatpush3.bf16.msra.mxu0 %v2716_v23  ;;  %v2764_v6 = vld [vmem:[%s3386_s2 + $0xcc] ss:$16 sps:$4 sm:$0xff]   ;;  %v773_v7 = vld [vmem:[%s3387_s3 + $0x60] sm:$0xff]  ;;  %v775_v9 = vld [vmem:[%s3387_s3 + $0x70] sm:$0xff] }
 0x1b4   : > { %2448 = vmatpush3.bf16.msra.mxu1 %v2717_v24  ;;  %2385 = vmatprep.subr.bf16.mxu0 %v2718_v25  ;;  %v774_v8 = vld [vmem:[%s3387_s3 + $0x68] sm:$0xff]  ;;  %v2766_v10 = vld [vmem:[%s3386_s2 + $0xc0] ss:$16 sps:$4 sm:$0xff]   ;;  %v776_v11 = vld [vmem:[%s3387_s3 + $0x78] sm:$0xff] }
 0x1b5   : > { %2449 = vmatprep.subr.bf16.mxu1 %v2719_v26  ;;  %814 = vperm.xlu1 %2693, %v768_v59   ;;  %v2767_v12 = vld [vmem:[%s3386_s2 + $0xc8] ss:$16 sps:$4 sm:$0xff]   ;;  %v2768_v13 = vld [vmem:[%s3386_s2 + $0xe4] ss:$16 sps:$4 sm:$0xff]   ;;  %v2770_v14 = vld [vmem:[%s3386_s2 + $0xec] ss:$16 sps:$4 sm:$0xff]  }
 0x1b6   : > { %799 = vperm.xlu0 %2692, %v765_v55   ;;  %v2772_v15 = vld [vmem:[%s3386_s2 + $0xe0] ss:$16 sps:$4 sm:$0xff]   ;;  %v2773_v16 = vld [vmem:[%s3386_s2 + $0xe8] ss:$16 sps:$4 sm:$0xff]  }
 0x1b7   : > { %2386 = vmatpush3.bf16.msra.mxu0 %v2720_v27 }
 0x1b8   : > { %2450 = vmatpush3.bf16.msra.mxu1 %v2721_v28  ;;  %2387 = vmatprep.subr.bf16.mxu0 %v2722_v29 }
 0x1b9   : > { %2451 = vmatprep.subr.bf16.mxu1 %v2723_v30  ;;  %824 = vperm.xlu1 %2693, %v770_v0  }
 0x1ba   : > { %809 = vperm.xlu0 %2692, %v767_v57  }
 0x1bb   : > { %2388 = vmatpush3.bf16.msra.mxu0 %v2724_v31 }
 0x1bc   : > { %2452 = vmatpush3.bf16.msra.mxu1 %v2725_v32  ;;  %2541 = vmatprep.subr.mxu0 %v2839_v17 }
 0x1bd   : > { %834 = vperm.xlu1 %2693, %v772_v3   ;;  %2576 = vmatprep.subr.mxu1 %v2839_v17 }
 0x1be   : > { %1242 = vmatmul.mubr.bf16.vlgmr.msra.gmra.mxu0 %v2726_v33  ;;  %819 = vperm.xlu0 %2692, %v769_v63  }
 0x1bf   : > { %1339 = vmatmul.mubr.bf16.vlgmr.msra.gmra.mxu1 %v2729_v35  ;;  %1249 = vmatprep.mubr.bf16.mxu0 %v2732_v37 }
 0x1c0   : > { %1346 = vmatprep.mubr.bf16.mxu1 %v2734_v38 }
 0x1c1   : > { %844 = vperm.xlu1 %2693, %v774_v8  }
 0x1c2   : > { %829 = vperm.xlu0 %2692, %v771_v1  }
 0x1c5   : > { %854 = vperm.xlu1 %2693, %v776_v11  }
 0x1c6   : > { %1250 = vmatmul.mubr.bf16.gmra.mxu0 %v2736_v39  ;;  %839 = vperm.xlu0 %2692, %v773_v7  }
 0x1c7   : > { %1347 = vmatmul.mubr.bf16.gmra.mxu1 %v2737_v40  ;;  %1257 = vmatprep.mubr.bf16.mxu0 %v2738_v41 }
 0x1c8   : > { %1354 = vmatprep.mubr.bf16.mxu1 %v2740_v42 }
 0x1ca   : > { %849 = vperm.xlu0 %2692, %v775_v9  }
 0x1ce   : > { %1258 = vmatmul.mubr.bf16.gmra.mxu0 %v2742_v43 }
 0x1cf   : > { %1355 = vmatmul.mubr.bf16.gmra.mxu1 %v2743_v44  ;;  %1265 = vmatprep.mubr.bf16.mxu0 %v2744_v45 }
 0x1d0   : > { %1362 = vmatprep.mubr.bf16.mxu1 %v2746_v46 }
 0x1d6   : > { %1266 = vmatmul.mubr.bf16.gmra.mxu0 %v2748_v50 }
 0x1d7   : > { %1363 = vmatmul.mubr.bf16.gmra.mxu1 %v2749_v52  ;;  %1273 = vmatprep.mubr.bf16.mxu0 %v2750_v53 }
 0x1d8   : > { %1370 = vmatprep.mubr.bf16.mxu1 %v2752_v54 }
 0x1de   : > { %1274 = vmatmul.mubr.bf16.gmra.mxu0 %v2754_v58 }
 0x1df   : > { %1371 = vmatmul.mubr.bf16.gmra.mxu1 %v2755_v60  ;;  %1281 = vmatprep.mubr.bf16.mxu0 %v2756_v61 }
 0x1e0   : > { %1378 = vmatprep.mubr.bf16.mxu1 %v2758_v62 }
 0x1e6   : > { %1282 = vmatmul.mubr.bf16.gmra.mxu0 %v2760_v2 }
 0x1e7   : > { %1379 = vmatmul.mubr.bf16.gmra.mxu1 %v2761_v4  ;;  %1289 = vmatprep.mubr.bf16.mxu0 %v2762_v5 }
 0x1e8   : > { %1386 = vmatprep.mubr.bf16.mxu1 %v2764_v6 }
 0x1ee   : > { %1290 = vmatmul.mubr.bf16.gmra.mxu0 %v2766_v10 }
 0x1ef   : > { %1387 = vmatmul.mubr.bf16.gmra.mxu1 %v2767_v12  ;;  %1297 = vmatprep.mubr.bf16.mxu0 %v2768_v13 }
 0x1f0   : > { %1394 = vmatprep.mubr.bf16.mxu1 %v2770_v14 }
 0x1f6   : > { %1298 = vmatmul.mubr.bf16.gmra.mxu0 %v2772_v15 }
 0x1f7   : > { %1395 = vmatmul.mubr.bf16.gmra.mxu1 %v2773_v16  ;;  %2573 = vmatprep.mubr.msk.f32.mxu0 %vm2840_vm2, %v2839_v17 }
 0x1f8   : > { %2608 = vmatprep.mubr.msk.f32.mxu1 %vm2840_vm2, %v2839_v17 }
 0x220   : > { %v790_v37 = vpop.permute.xlu1 %789 }
 0x225   : > { %v795_v45 = vpop.permute.xlu1 %794 }
 0x229   : > { %v780_v34 = vpop.permute.xlu0 %779 }
 0x22c   : > { %v805_v58 = vpop.permute.xlu1 %804 }
 0x22d   : > { %v785_v42 = vpop.permute.xlu0 %784 }
 0x231   : > { %v800_v53 = vpop.permute.xlu0 %799 }
 0x235   : > { %v810_v8 = vpop.permute.xlu0 %809 }
 0x27e   : > { %v2389_v18 = vpop.f32.mrf.mxu0 }
 0x27f   : > { %v2453_v19 = vpop.f32.mrf.mxu1 }
 0x280   : > { %v2390_v20 = vpop.f32.mrf.mxu0 }
 0x281   : > { %v2454_v21 = vpop.f32.mrf.mxu1  ;;  %v2391_v50 = vadd.f32 %v2390_v20, %v2389_v18  ;;  %v815_v18 = vpop.permute.xlu1 %814 }
 0x282   : > { %v2392_v22 = vpop.f32.mrf.mxu0  ;;  %v2455_v1 = vadd.f32 %v2454_v21, %v2453_v19 }
 0x283   : > { %v2456_v23 = vpop.f32.mrf.mxu1  ;;  %v1244_v61 = vadd.f32 %v2391_v50, %v780_v34 }
 0x284   : > { %v2393_v24 = vpop.f32.mrf.mxu0 }
 0x285   : > { %v2457_v25 = vpop.f32.mrf.mxu1  ;;  %v2394_v47 = vadd.f32 %v2393_v24, %v2392_v22  ;;  %v3193_v12 = vadd.f32 %v2455_v1, %v1244_v61 }
 0x286   : > { %v2395_v26 = vpop.f32.mrf.mxu0  ;;  %v2458_v62 = vadd.f32 %v2457_v25, %v2456_v23 }
 0x287   : > { %v2459_v27 = vpop.f32.mrf.mxu1  ;;  %v1247_v55 = vadd.f32 %v2394_v47, %v785_v42 }
 0x288   : > { %v2396_v28 = vpop.f32.mrf.mxu0 }
 0x289   : > { %v2460_v29 = vpop.f32.mrf.mxu1  ;;  %v2397_v51 = vadd.f32 %v2396_v28, %v2395_v26  ;;  %v3191_v3 = vadd.f32 %v2458_v62, %v1247_v55  ;;  %v1403_v28 = vmul.f32 %v3193_v12, %v3193_v12 }
 0x28a   : > { %v2398_v30 = vpop.f32.mrf.mxu0  ;;  %v2461_v4 = vadd.f32 %v2460_v29, %v2459_v27 }
 0x28b   : > { %v2462_v31 = vpop.f32.mrf.mxu1  ;;  %v1252_v63 = vadd.f32 %v2397_v51, %v790_v37  ;;  %v1404_v21 = vmul.f32 %v3191_v3, %v3191_v3  ;;  %v1420_v47 = vsel %vm1419_vm3, %v1403_v28, 0.0 }
 0x28c   : > { %v2399_v32 = vpop.f32.mrf.mxu0 }
 0x28d   : > { %v2463_v33 = vpop.f32.mrf.mxu1  ;;  %v2400_v56 = vadd.f32 %v2399_v32, %v2398_v30  ;;  %v3195_v13 = vadd.f32 %v2461_v4, %v1252_v63  ;;  %v1421_v37 = vsel %vm1419_vm3, %v1404_v21, 0.0 }
 0x28e   : > { %v2401_v35 = vpop.f32.mrf.mxu0  ;;  %v2464_v14 = vadd.f32 %v2463_v33, %v2462_v31  ;;  %v820_v33 = vpop.permute.xlu0 %819 }
 0x28f   : > { %v2465_v36 = vpop.f32.mrf.mxu1  ;;  %v1255_v5 = vadd.f32 %v2400_v56, %v795_v45  ;;  %v1405_v29 = vmul.f32 %v3195_v13, %v3195_v13 }
 0x290   : > { %v2402_v38 = vpop.f32.mrf.mxu0 }
 0x291   : > { %v2466_v39 = vpop.f32.mrf.mxu1  ;;  %v2403_v59 = vadd.f32 %v2402_v38, %v2401_v35  ;;  %v3199_v22 = vadd.f32 %v2464_v14, %v1255_v5 }
 0x292   : > { %v2404_v40 = vpop.f32.mrf.mxu0  ;;  %v2467_v16 = vadd.f32 %v2466_v39, %v2465_v36  ;;  %v830_v62 = vpop.permute.xlu0 %829 }
 0x293   : > { %v2468_v41 = vpop.f32.mrf.mxu1  ;;  %v1260_v9 = vadd.f32 %v2403_v59, %v800_v53  ;;  %v1406_v38 = vmul.f32 %v3199_v22, %v3199_v22 }
 0x294   : > { %v2405_v43 = vpop.f32.mrf.mxu0 }
 0x295   : > { %v2469_v44 = vpop.f32.mrf.mxu1  ;;  %v2406_v6 = vadd.f32 %v2405_v43, %v2404_v40  ;;  %v3201_v25 = vadd.f32 %v2467_v16, %v1260_v9  ;;  %v1425_v55 = vsel %vm1419_vm3, %v1406_v38, 0.0 }
 0x296   : > { %v2407_v46 = vpop.f32.mrf.mxu0  ;;  %v2470_v30 = vadd.f32 %v2469_v44, %v2468_v41  ;;  %v825_v41 = vpop.permute.xlu1 %824 }
 0x297   : > { %v2471_v48 = vpop.f32.mrf.mxu1  ;;  %v1263_v23 = vadd.f32 %v2406_v6, %v805_v58  ;;  %v1407_v43 = vmul.f32 %v3201_v25, %v3201_v25 }
 0x298   : > { %v2408_v49 = vpop.f32.mrf.mxu0 }
 0x299   : > { %v2472_v52 = vpop.f32.mrf.mxu1  ;;  %v2409_v10 = vadd.f32 %v2408_v49, %v2407_v46  ;;  %v3210_v39 = vadd.f32 %v2470_v30, %v1263_v23  ;;  %v1427_v61 = vsel %vm1419_vm3, %v1407_v43, 0.0  ;;  %v840_v30 = vpop.permute.xlu0 %839 }
 0x29a   : > { %v2410_v54 = vpop.f32.mrf.mxu0  ;;  %v2473_v34 = vadd.f32 %v2472_v52, %v2471_v48  ;;  %v1423_v48 = vsel %vm1419_vm3, %v1405_v29, 0.0  ;;  %v1422_v52 = vadd.f32 %v1421_v37, %v1420_v47  ;;  %v835_v9 = vpop.permute.xlu1 %834 }
 0x29b   : > { %v2474_v57 = vpop.f32.mrf.mxu1  ;;  %v1268_v26 = vadd.f32 %v2409_v10, %v810_v8  ;;  %v1408_v56 = vmul.f32 %v3210_v39, %v3210_v39 }
 0x29c   : > { %v2411_v60 = vpop.f32.mrf.mxu0 }
 0x29d   : > { %v2475_v0 = vpop.f32.mrf.mxu1  ;;  %v2412_v19 = vadd.f32 %v2411_v60, %v2410_v54  ;;  %v3214_v44 = vadd.f32 %v2473_v34, %v1268_v26  ;;  %v1424_v60 = vadd.f32 %v1423_v48, %v1422_v52 }
 0x29e   : > { %v2413_v2 = vpop.f32.mrf.mxu0  ;;  %v2476_v45 = vadd.f32 %v2475_v0, %v2474_v57  ;;  %v845_v48 = vpop.permute.xlu1 %844 }
 0x29f   : > { %v2477_v7 = vpop.f32.mrf.mxu1  ;;  %v1271_v35 = vadd.f32 %v2412_v19, %v815_v18  ;;  %v1409_v63 = vmul.f32 %v3214_v44, %v3214_v44  ;;  %v1426_v8 = vadd.f32 %v1425_v55, %v1424_v60 }
 0x2a0   : > { %v2414_v11 = vpop.f32.mrf.mxu0 }
 0x2a1   : > { %v2478_v15 = vpop.f32.mrf.mxu1  ;;  %v2415_v31 = vadd.f32 %v2414_v11, %v2413_v2  ;;  %v3218_v53 = vadd.f32 %v2476_v45, %v1271_v35  ;;  %v1429_v11 = vsel %vm1419_vm3, %v1408_v56, 0.0  ;;  %v1428_v19 = vadd.f32 %v1427_v61, %v1426_v8 }
 0x2a2   : > { %v2416_v20 = vpop.f32.mrf.mxu0  ;;  %v2479_v58 = vadd.f32 %v2478_v15, %v2477_v7 }
 0x2a3   : > { %v2480_v24 = vpop.f32.mrf.mxu1  ;;  %v1276_v49 = vadd.f32 %v2415_v31, %v820_v33  ;;  %v1410_v7 = vmul.f32 %v3218_v53, %v3218_v53  ;;  %v1430_v29 = vadd.f32 %v1429_v11, %v1428_v19  ;;  %v855_v19 = vpop.permute.xlu1 %854 }
 0x2a4   : > { %v2417_v27 = vpop.f32.mrf.mxu0 }
 0x2a5   : > { %v2481_v32 = vpop.f32.mrf.mxu1  ;;  %v2418_v40 = vadd.f32 %v2417_v27, %v2416_v20  ;;  %v3226_v1 = vadd.f32 %v2479_v58, %v1276_v49  ;;  %v1431_v20 = vsel %vm1419_vm3, %v1409_v63, 0.0  ;;  %v1433_v31 = vsel %vm1419_vm3, %v1410_v7, 0.0  ;;  %v850_v63 = vpop.permute.xlu0 %849 }
 0x2a6   : > { %v2419_v36 = vpop.f32.mrf.mxu0  ;;  %v2482_v2 = vadd.f32 %v2481_v32, %v2480_v24  ;;  %v1432_v38 = vadd.f32 %v1431_v20, %v1430_v29 }
 0x2a7   : > { %v2483_v42 = vpop.f32.mrf.mxu1  ;;  %v1279_v59 = vadd.f32 %v2418_v40, %v825_v41  ;;  %v1411_v23 = vmul.f32 %v3226_v1, %v3226_v1 }
 0x2a8   : > { %v2420_v46 = vpop.f32.mrf.mxu0  ;;  %v1434_v47 = vadd.f32 %v1433_v31, %v1432_v38 }
 0x2a9   : > { %v2421_v50 = vadd.f32 %v2420_v46, %v2419_v36  ;;  %v2484_v51 = vpop.f32.mrf.mxu1  ;;  %v3231_v14 = vadd.f32 %v2482_v2, %v1279_v59 }
 0x2aa   : > { %v2422_v54 = vpop.f32.mrf.mxu0  ;;  %v2485_v15 = vadd.f32 %v2484_v51, %v2483_v42  ;;  %v1435_v42 = vsel %vm1419_vm3, %v1411_v23, 0.0 }
 0x2ab   : > { %v2486_v57 = vpop.f32.mrf.mxu1  ;;  %v1284_v4 = vadd.f32 %v2421_v50, %v830_v62  ;;  %v1412_v33 = vmul.f32 %v3231_v14, %v3231_v14  ;;  %v1436_v56 = vadd.f32 %v1435_v42, %v1434_v47 }
 0x2ac   : > { %v2423_v0 = vpop.f32.mrf.mxu0 }
 0x2ad   : > { %v2424_v5 = vadd.f32 %v2423_v0, %v2422_v54  ;;  %v2487_v6 = vpop.f32.mrf.mxu1  ;;  %v3236_v24 = vadd.f32 %v2485_v15, %v1284_v4  ;;  %v1437_v50 = vsel %vm1419_vm3, %v1412_v33, 0.0 }
 0x2ae   : > { %v2425_v10 = vpop.f32.mrf.mxu0  ;;  %v2488_v26 = vadd.f32 %v2487_v6, %v2486_v57  ;;  %v1438_v0 = vadd.f32 %v1437_v50, %v1436_v56 }
 0x2af   : > { %v1287_v16 = vadd.f32 %v2424_v5, %v835_v9  ;;  %v2489_v18 = vpop.f32.mrf.mxu1  ;;  %v1413_v43 = vmul.f32 %v3236_v24, %v3236_v24 }
 0x2b0   : > { %v2426_v21 = vpop.f32.mrf.mxu0 }
 0x2b1   : > { %v2427_v27 = vadd.f32 %v2426_v21, %v2425_v10  ;;  %v2490_v28 = vpop.f32.mrf.mxu1  ;;  %v3241_v34 = vadd.f32 %v2488_v26, %v1287_v16  ;;  %v1439_v59 = vsel %vm1419_vm3, %v1413_v43, 0.0 }
 0x2b2   : > { %v2428_v32 = vpop.f32.mrf.mxu0  ;;  %v2491_v36 = vadd.f32 %v2490_v28, %v2489_v18  ;;  %v1440_v7 = vadd.f32 %v1439_v59, %v1438_v0 }
 0x2b3   : > { %v1292_v35 = vadd.f32 %v2427_v27, %v840_v30  ;;  %v2492_v37 = vpop.f32.mrf.mxu1  ;;  %v1414_v51 = vmul.f32 %v3241_v34, %v3241_v34 }
 0x2b4   : > { %v2429_v40 = vpop.f32.mrf.mxu0 }
 0x2b5   : > { %v3246_v41 = vadd.f32 %v2491_v36, %v1292_v35  ;;  %v2430_v45 = vadd.f32 %v2429_v40, %v2428_v32  ;;  %v2493_v46 = vpop.f32.mrf.mxu1  ;;  %v1441_v4 = vsel %vm1419_vm3, %v1414_v51, 0.0 }
 0x2b6   : > { %v2431_v49 = vpop.f32.mrf.mxu0  ;;  %v2494_v54 = vadd.f32 %v2493_v46, %v2492_v37  ;;  %v1442_v20 = vadd.f32 %v1441_v4, %v1440_v7 }
 0x2b7   : > { %v1295_v52 = vadd.f32 %v2430_v45, %v845_v48  ;;  %v2495_v55 = vpop.f32.mrf.mxu1  ;;  %v1415_v57 = vmul.f32 %v3246_v41, %v3246_v41 }
 0x2b8   : > { %v2432_v58 = vpop.f32.mrf.mxu0 }
 0x2b9   : > { %v1392_v60 = vadd.f32 %v2494_v54, %v1295_v52  ;;  %v2433_v61 = vadd.f32 %v2432_v58, %v2431_v49  ;;  %v2496_v62 = vpop.f32.mrf.mxu1  ;;  %v1443_v11 = vsel %vm1419_vm3, %v1415_v57, 0.0 }
 0x2ba   : > { %v2434_v2 = vpop.f32.mrf.mxu0  ;;  %v2497_v8 = vadd.f32 %v2496_v62, %v2495_v55  ;;  %v1444_v28 = vadd.f32 %v1443_v11, %v1442_v20  ;;  %v1475_v55 = vld [vmem:[#allocation2] sm:$0x3] }
 0x2bb   : > { %v1416_v5 = vmul.f32 %v1392_v60, %v1392_v60  ;;  %v1300_v6 = vadd.f32 %v2433_v61, %v850_v63  ;;  %v2498_v9 = vpop.f32.mrf.mxu1 }
 0x2bc   : > { %v2435_v10 = vpop.f32.mrf.mxu0 }
 0x2bd   : > { %v1397_v15 = vadd.f32 %v2497_v8, %v1300_v6  ;;  %v2436_v16 = vadd.f32 %v2435_v10, %v2434_v2  ;;  %v2499_v18 = vpop.f32.mrf.mxu1  ;;  %v1445_v21 = vsel %vm1419_vm3, %v1416_v5, 0.0 }
 0x2be   : > { %v2500_v27 = vadd.f32 %v2499_v18, %v2498_v9  ;;  %v1446_v31 = vadd.f32 %v1445_v21, %v1444_v28 }
 0x2bf   : > { %v1417_v23 = vmul.f32 %v1397_v15, %v1397_v15  ;;  %v1303_v26 = vadd.f32 %v2436_v16, %v855_v19  ;;  %v1720_v16 = vld [vmem:[#allocation5] sm:$0x3] }
 0x2c1   : > { %v1447_v29 = vsel %vm1419_vm3, %v1417_v23, 0.0  ;;  %v1400_v30 = vadd.f32 %v2500_v27, %v1303_v26 }
 0x2c2   : > { %v1448_v33 = vadd.f32 %v1447_v29, %v1446_v31 }
 0x2c3   : > { %v1418_v32 = vmul.f32 %v1400_v30, %v1400_v30 }
 0x2c5   : > { %v1449_v35 = vsel %vm1419_vm3, %v1418_v32, 0.0 }
 0x2c6   : > { %v1450_v36 = vadd.f32 %v1449_v35, %v1448_v33  ;;  %v1700_v33 = vld [vmem:[#allocation3] sm:$0x3]  ;;  %v1707_v35 = vld [vmem:[#allocation4] sm:$0x3] }
 0x2c8   : > { %v1451_v37 = vrot.slane %v1450_v36, 4 }
 0x2ca   : > { %v1452_v38 = vadd.f32 %v1451_v37, %v1450_v36 }
 0x2cc   : > { %v1453_v40 = vrot.slane %v1452_v38, 2 }
 0x2ce   : > { %v1454_v42 = vadd.f32 %v1453_v40, %v1452_v38 }
 0x2d0   : > { %v1455_v43 = vrot.slane %v1454_v42, 1 }
 0x2d2   : > { %v1456_v45 = vadd.f32 %v1455_v43, %v1454_v42 }
 0x2d4   : > { %v1457_v46 = vmax.f32 %v1456_v45, 1e-24 }
 0x2d6   : > { %2774 = vrsqrt.f32 %v1457_v46 }
 0x2e3   : > { %v2775_v47 = vpop.eup %2774 }
 0x2e4   : > { %v1474_v48 = vmul.f32 %v2775_v47, %v1400_v30  ;;  %v1473_v49 = vmul.f32 %v2775_v47, %v1397_v15  ;;  %v1472_v50 = vmul.f32 %v2775_v47, %v1392_v60  ;;  %v1471_v51 = vmul.f32 %v2775_v47, %v3246_v41 }
 0x2e5   : > { %v1470_v52 = vmul.f32 %v2775_v47, %v3241_v34  ;;  %v1469_v54 = vmul.f32 %v2775_v47, %v3236_v24  ;;  %v1468_v41 = vmul.f32 %v2775_v47, %v3231_v14  ;;  %v1467_v34 = vmul.f32 %v2775_v47, %v3226_v1 }
 0x2e6   : > { %2542 = vmatpush3.msra.mxu0 %v1474_v48  ;;  %2577 = vmatpush3.xpose.msk.msra.mxu1 %vm1419_vm3, %v1474_v48  ;;  %v1466_v24 = vmul.f32 %v2775_v47, %v3218_v53  ;;  %v1465_v14 = vmul.f32 %v2775_v47, %v3214_v44  ;;  %v1464_v1 = vmul.f32 %v2775_v47, %v3210_v39 }
 0x2e7   : > { %2543 = vmatprep.subr.mxu0 %v2839_v17  ;;  %2578 = vmatprep.subr.mxu1 %v2839_v17  ;;  %v1463_v53 = vmul.f32 %v2775_v47, %v3201_v25  ;;  %v1462_v44 = vmul.f32 %v2775_v47, %v3199_v22  ;;  %v1461_v39 = vmul.f32 %v2775_v47, %v3195_v13  ;;  %v1549_v13 = vstv %s2890_s25 }
 0x2e8   : > { %2544 = vmatpush3.msra.mxu0 %v1473_v49  ;;  %v1460_v25 = vmul.f32 %v2775_v47, %v3191_v3  ;;  %v1459_v22 = vmul.f32 %v2775_v47, %v3193_v12  ;;  %v1547_v3 = vlaneseq }
 0x2e9   : > { %2545 = vmatprep.subr.mxu0 %v2839_v17 }
 0x2ea   : > { %2546 = vmatpush3.msra.mxu0 %v1472_v50  ;;  %2579 = vmatpush3.xpose.msk.msra.mxu1 %vm1419_vm3, %v1473_v49  ;;  %v3318_v12 = vshrl.u32 %v1547_v3, 7  ;;  %v1718_v7 = vand.u32 127, %v1547_v3 }
 0x2eb   : > { %2547 = vmatprep.subr.mxu0 %v2839_v17  ;;  %2580 = vmatprep.subr.mxu1 %v2839_v17 }
 0x2ec   : > { %2548 = vmatpush3.msra.mxu0 %v1471_v51  ;;  %vm3322_vm4 = vcmp.eq.s32.totalorder %v3318_v12, %v1549_v13  ;;  %vm1719_vm7 = vcmp.eq.s32.totalorder %v1718_v7, %v1549_v13  ;;  %v1703_v29 = vsub.s32 0, %v3318_v12  ;;  %v1710_v30 = vsub.s32 1, %v3318_v12 }
 0x2ed   : > { %2549 = vmatprep.subr.mxu0 %v2839_v17 }
 0x2ee   : > { %2550 = vmatpush3.msra.mxu0 %v1470_v52  ;;  %2581 = vmatpush3.xpose.msk.msra.mxu1 %vm1419_vm3, %v1472_v50 }
 0x2ef   : > { %2551 = vmatprep.subr.mxu0 %v2839_v17  ;;  %2582 = vmatprep.subr.mxu1 %v2839_v17 }
 0x2f0   : > { %2552 = vmatpush3.msra.mxu0 %v1469_v54 }
 0x2f1   : > { %2553 = vmatprep.subr.mxu0 %v2839_v17 }
 0x2f2   : > { %2554 = vmatpush3.msra.mxu0 %v1468_v41  ;;  %2583 = vmatpush3.xpose.msk.msra.mxu1 %vm1419_vm3, %v1471_v51 }
 0x2f3   : > { %2555 = vmatprep.subr.mxu0 %v2839_v17  ;;  %2584 = vmatprep.subr.mxu1 %v2839_v17 }
 0x2f4   : > { %2556 = vmatpush3.msra.mxu0 %v1467_v34 }
 0x2f5   : > { %2557 = vmatprep.subr.mxu0 %v2839_v17 }
 0x2f6   : > { %2558 = vmatpush3.msra.mxu0 %v1466_v24  ;;  %2585 = vmatpush3.xpose.msk.msra.mxu1 %vm1419_vm3, %v1470_v52 }
 0x2f7   : > { %2559 = vmatprep.subr.mxu0 %v2839_v17  ;;  %2586 = vmatprep.subr.mxu1 %v2839_v17 }
 0x2f8   : > { %2560 = vmatpush3.msra.mxu0 %v1465_v14 }
 0x2f9   : > { %2561 = vmatprep.subr.mxu0 %v2839_v17 }
 0x2fa   : > { %2562 = vmatpush3.msra.mxu0 %v1464_v1  ;;  %2587 = vmatpush3.xpose.msk.msra.mxu1 %vm1419_vm3, %v1469_v54 }
 0x2fb   : > { %2563 = vmatprep.subr.mxu0 %v2839_v17  ;;  %2588 = vmatprep.subr.mxu1 %v2839_v17 }
 0x2fc   : > { %2564 = vmatpush3.msra.mxu0 %v1463_v53 }
 0x2fd   : > { %2565 = vmatprep.subr.mxu0 %v2839_v17 }
 0x2fe   : > { %2566 = vmatpush3.msra.mxu0 %v1462_v44  ;;  %2589 = vmatpush3.xpose.msk.msra.mxu1 %vm1419_vm3, %v1468_v41 }
 0x2ff   : > { %2567 = vmatprep.subr.mxu0 %v2839_v17  ;;  %2590 = vmatprep.subr.mxu1 %v2839_v17 }
 0x300   : > { %2568 = vmatpush3.msra.mxu0 %v1461_v39 }
 0x301   : > { %2569 = vmatprep.subr.mxu0 %v2839_v17 }
 0x302   : > { %2570 = vmatpush3.msra.mxu0 %v1460_v25  ;;  %2591 = vmatpush3.xpose.msk.msra.mxu1 %vm1419_vm3, %v1467_v34 }
 0x303   : > { %2571 = vmatprep.subr.mxu0 %v2839_v17  ;;  %2592 = vmatprep.subr.mxu1 %v2839_v17 }
 0x304   : > { %2572 = vmatpush3.msra.mxu0 %v1459_v22 }
 0x305   : > { %2574 = vmatmul.mubr.f32.vlgmr.msra.gmra.mxu0 %v1475_v55 }
 0x306   : > { %2593 = vmatpush3.xpose.msk.msra.mxu1 %vm1419_vm3, %v1466_v24 }
 0x307   : > { %2594 = vmatprep.subr.mxu1 %v2839_v17 }
 0x30a   : > { %2595 = vmatpush3.xpose.msk.msra.mxu1 %vm1419_vm3, %v1465_v14 }
 0x30b   : > { %2596 = vmatprep.subr.mxu1 %v2839_v17 }
 0x30e   : > { %2597 = vmatpush3.xpose.msk.msra.mxu1 %vm1419_vm3, %v1464_v1 }
 0x30f   : > { %2598 = vmatprep.subr.mxu1 %v2839_v17 }
 0x312   : > { %2599 = vmatpush3.xpose.msk.msra.mxu1 %vm1419_vm3, %v1463_v53 }
 0x313   : > { %2600 = vmatprep.subr.mxu1 %v2839_v17 }
 0x316   : > { %2601 = vmatpush3.xpose.msk.msra.mxu1 %vm1419_vm3, %v1462_v44 }
 0x317   : > { %2602 = vmatprep.subr.mxu1 %v2839_v17 }
 0x31a   : > { %2603 = vmatpush3.xpose.msk.msra.mxu1 %vm1419_vm3, %v1461_v39 }
 0x31b   : > { %2604 = vmatprep.subr.mxu1 %v2839_v17 }
 0x31e   : > { %2605 = vmatpush3.xpose.msk.msra.mxu1 %vm1419_vm3, %v1460_v25 }
 0x31f   : > { %2606 = vmatprep.subr.mxu1 %v2839_v17 }
 0x322   : > { %2607 = vmatpush3.xpose.msk.msra.mxu1 %vm1419_vm3, %v1459_v22 }
 0x3c5   : > { %v1542_v56 = vpop.f32.mrf.mxu0 }
 0x3c6   : > { %v1546_v59 = vmul.f32 33.333332, %v1542_v56 }
 0x3c7   : > { %v2575_v57 = vpop.f32.mrf.mxu0 }
 0x3c8   : > { %v1551_v60 = vsel %vm3322_vm4, %v1546_v59, 0.0  ;;  %v1714_v9 = vsel %vm1552_vm5, %v1546_v59, -inf }
 0x3c9   : > { %v1553_v61 = vsel %vm1552_vm5, %v1551_v60, 0.0 }
 0x3ca   : > { %v1554_v62 = vrot.slane %v1553_v61, 4 }
 0x3cc   : > { %v1555_v63 = vadd.f32 %v1554_v62, %v1553_v61 }
 0x3ce   : > { %v1556_v0 = vrot.slane %v1555_v63, 2 }
 0x3d0   : > { %v1557_v2 = vadd.f32 %v1556_v0, %v1555_v63 }
 0x3d2   : > { %v1558_v4 = vrot.slane %v1557_v2, 1 }
 0x3d4   : > { %v1559_v5 = vadd.f32 %v1558_v4, %v1557_v2 }
 0x3d6   : > { %v1565_v6 = vsel %vm1419_vm3, %v1559_v5, -inf  ;;  %1561 = vst.msk [vmem:[%s273_s30] sm:$0x1] %vm1560_vm6, %v1559_v5  ;;  %v1562_v8 = vsel %vm1419_vm3, %v1559_v5, inf }
 0x3d7   : > { %1566 = vmax.xlane.f32.xlu1 %v1565_v6  ;;  %1563 = vmin.xlane.f32.xlu0 %v1562_v8 }
 0x3db   : > { %1715 = vmax.xlane.f32.xlu0 %v1714_v9 }
 0x460   : > { %v1567_v10 = vpop.xlane.xlu1 %1566  ;;  %v1564_v11 = vpop.xlane.xlu0 %1563 }
 0x461   : > { %v1569_v15 = vsub.f32 %v1567_v10, %v1564_v11  ;;  %v1568_v21 = vsub.f32 %v1559_v5, %v1564_v11 }
 0x463   : > { %v1570_v18 = vadd.f32 1e-05, %v1569_v15 }
 0x464   : > { %v1716_v19 = vpop.xlane.xlu0 %1715 }
 0x465   : > { %2776 = vrcp.f32 %v1570_v18  ;;  %v1721_v20 = vsel %vm1719_vm7, %v1716_v19, %v1720_v16 }
 0x466   : > { %1723 = vst.msk [vmem:[#allocation5] sm:$0x3] %vm1722_vm8, %v1721_v20 }
 0x472   : > { %v2777_v23 = vpop.eup %2776 }
 0x473   : > { %v1572_v26 = vmul.f32 %v2777_v23, %v1568_v21 }
 0x475   : > { %vm1573_vm10 = vcmp.gt.f32.partialorder %v1572_v26, 0.6 }
 0x476   : > { %v2304_v27 = vsel %vm1573_vm10, 1.0, %v2839_v17 }
 0x477   : > { %v1577_v28 = vsel %vm1576_vm9, %v2304_v27, 1.0 }
 0x478   : > { %2609 = vmatmul.mubr.msk.f32.vlgmr.msra.gmra.mxu1 %vm1419_vm3, %v1577_v28 }
 0x538   : > { %v1695_v31 = vpop.f32.mrf.mxu1 }
 0x539   : > { %v1699_v32 = vmul.f32 0.020408163, %v1695_v31 }
 0x53a   : > { %v2610_v36 = vpop.f32.mrf.mxu1  ;;  %1727 = sbr.rel (%p2322_p5) target bundleno = 1871 (0x74f), region = 52 }
 0x53b   : > { %v1704_v37 = vrot.slane %v1699_v32, %v1703_v29  ;;  %v1711_v38 = vrot.slane %v1699_v32, %v1710_v30 }
 0x53d   : > { %v1705_v40 = vsel %vm3322_vm4, %v1704_v37, %v1700_v33  ;;  %v1712_v17 = vsel %vm3322_vm4, %v1711_v38, %v1707_v35 }
 0x53e   : > { %1706 = vst [vmem:[#allocation3] sm:$0x3] %v1705_v40  ;;  %1713 = vst [vmem:[#allocation4] sm:$0x3] %v1712_v17 }
 0x53f   : > { %v1731_v42 = vld [vmem:[#allocation5] sm:$0x3]  ;;  %v1728_v43 = vld [vmem:[#allocation2] sm:$0x3]  ;;  %v2841_v46 = vmov 0.0   ;;  %vm2842_vm11 = vmmov 0   ;;  %vm1945_vm12 = vcmp.eq.s32.totalorder %v3318_v12, %v1718_v7 }
 0x540   : > { %v1948_v45 = vsel %vm1722_vm8, %v1731_v42, -inf  ;;  %2611 = vmatprep.subr.mxu0 %v2841_v46  ;;  %2613 = vmatprep.mubr.msk.f32.mxu0 %vm2842_vm11, %v2841_v46  ;;  %v2323_v49 = vsel %vm1945_vm12, 1.0, %v2841_v46  ;;  %vm1977_vm13 = vcmask 8192   ;;  %vm2004_vm14 = vcmask 1024  }
 0x541   : > { %1990 = vmax.xlane.f32.xlu0 %v1948_v45  ;;  %2612 = vmatpush3.xpose.msra.mxu0 %v1728_v43  ;;  %v1968_v50 = vmul.f32 %v2323_v49, %v1731_v42  ;;  %v1949_v52 = vrot.slane %v1948_v45, 4  ;;  %vm2119_vm15 = vcmask 7168   ;;  %vm2121_vm0 = vcmask 15360  }
 0x542   : > { %2616 = vmatprep.subr.mxu1 %v2841_v46  ;;  %2621 = vmatprep.subr.mxu0 %v2841_v46  ;;  %vm2123_vm1 = vcmask 23552   ;;  %vm2125_vm2 = vcmask 24576  }
 0x543   : > { %2618 = vmatprep.mubr.msk.f32.mxu1 %vm2842_vm11, %v2841_v46  ;;  %v1969_v51 = vsel %vm1722_vm8, %v1968_v50, 0.0  ;;  %v1950_v54 = vmax.f32 %v1948_v45, %v1949_v52 }
 0x544   : > { %2614 = vmatmul.mubr.f32.vlgmr.msra.gmra.mxu0 %v1728_v43  ;;  %2001 = vadd.xlane.f32.xlu1 %v1969_v51  ;;  %v1970_v3 = vrot.slane %v1969_v51, 4 }
 0x545   : > { %v1730_v47 = vld [vmem:[#allocation4] sm:$0x3]  ;;  %v1729_v48 = vld [vmem:[#allocation3] sm:$0x3]  ;;  %2623 = vmatprep.mubr.msk.f32.mxu0 %vm2842_vm11, %v2841_v46  ;;  %v1951_v41 = vrot.slane %v1950_v54, 2 }
 0x546   : > { %2617 = vmatpush3.xpose.msra.mxu1 %v1730_v47  ;;  %2622 = vmatpush3.xpose.msra.mxu0 %v1729_v48  ;;  %v1971_v56 = vadd.f32 %v1970_v3, %v1969_v51 }
 0x547   : > { %v1952_v34 = vmax.f32 %v1950_v54, %v1951_v41 }
 0x548   : > { %v1972_v59 = vrot.slane %v1971_v56, 2 }
 0x549   : > { %2619 = vmatmul.mubr.f32.vlgmr.msra.gmra.mxu1 %v1730_v47  ;;  %2624 = vmatmul.mubr.f32.vlgmr.msra.gmra.mxu0 %v1729_v48  ;;  %v1953_v24 = vrot.slane %v1952_v34, 1 }
 0x54a   : > { %v1973_v57 = vadd.f32 %v1972_v59, %v1971_v56 }
 0x54b   : > { %v1954_v14 = vmax.f32 %v1952_v34, %v1953_v24 }
 0x54c   : > { %v1974_v60 = vrot.slane %v1973_v57, 1 }
 0x54d   : > { %v1955_v1 = vsub.f32 %v1731_v42, %v1954_v14 }
 0x54e   : > { %v1975_v0 = vadd.f32 %v1974_v60, %v1973_v57 }
 0x54f   : > { %v1956_v53 = vmul.f32 1.442695, %v1955_v1 }
 0x551   : > { %2778 = vpow2.f32 %v1956_v53 }
 0x55e   : > { %v2779_v44 = vpop.eup %2778 }
 0x55f   : > { %v1958_v39 = vsel %vm1722_vm8, %v2779_v44, 0.0 }
 0x560   : > { %v1959_v25 = vrot.slane %v1958_v39, 4 }
 0x562   : > { %v1960_v22 = vadd.f32 %v1959_v25, %v1958_v39 }
 0x564   : > { %v1961_v55 = vrot.slane %v1960_v22, 2 }
 0x566   : > { %v1962_v12 = vadd.f32 %v1961_v55, %v1960_v22 }
 0x568   : > { %v1963_v13 = vrot.slane %v1962_v12, 1 }
 0x56a   : > { %v1964_v58 = vadd.f32 %v1963_v13, %v1962_v12 }
 0x56c   : > { %2780 = vlog2.f32 %v1964_v58 }
 0x56d   : > { %2782 = vrcp.f32 %v1964_v58 }
 0x579   : > { %v2781_v61 = vpop.eup %2780 }
 0x57a   : > { %v2783_v62 = vpop.eup %2782  ;;  %v1966_v63 = vmul.f32 0.6931472, %v2781_v61 }
 0x57b   : > { %v3351_v2 = vmul.f32 %v2783_v62, %v2779_v44 }
 0x57c   : > { %v1967_v4 = vadd.f32 %v1966_v63, %v1954_v14 }
 0x57e   : > { %v1976_v5 = vsub.f32 %v1967_v4, %v1975_v0 }
 0x580   : > { %v1978_v8 = vsel %vm1977_vm13, %v1976_v5, 0.0 }
 0x581   : > { %1979 = vadd.xlane.f32.xlu1 %v1978_v8 }
 0x5ca   : > { %v3353_v6 = vpop.xlane.xlu0 %1990 }
 0x5cb   : > { %v1992_v9 = vsub.f32 %v1731_v42, %v3353_v6 }
 0x5cd   : > { %v1993_v7 = vmul.f32 1.442695, %v1992_v9 }
 0x5cf   : > { %2784 = vpow2.f32 %v1993_v7 }
 0x5dc   : > { %v2785_v10 = vpop.eup %2784 }
 0x5dd   : > { %v1995_v11 = vsel %vm1722_vm8, %v2785_v10, 0.0 }
 0x5de   : > { %1996 = vadd.xlane.f32.xlu0 %v1995_v11 }
 0x604   : > { %v1798_v15 = vpop.f32.mrf.mxu0 }
 0x605   : > { %v1802_v16 = vmul.f32 33.333332, %v1798_v15 }
 0x606   : > { %v2615_v18 = vpop.f32.mrf.mxu0 }
 0x607   : > { %v2018_v20 = vsel %vm1722_vm8, %v1802_v16, -inf }
 0x608   : > { %v2019_v23 = vrot.slane %v2018_v20, 4 }
 0x609   : > { %v1869_v19 = vpop.f32.mrf.mxu1  ;;  %v1940_v26 = vpop.f32.mrf.mxu0 }
 0x60a   : > { %v1873_v21 = vmul.f32 33.333332, %v1869_v19  ;;  %v2020_v29 = vmax.f32 %v2018_v20, %v2019_v23  ;;  %v1944_v42 = vmul.f32 33.333332, %v1940_v26 }
 0x60b   : > { %v2620_v27 = vpop.f32.mrf.mxu1  ;;  %v2625_v31 = vpop.f32.mrf.mxu0 }
 0x60c   : > { %v2058_v28 = vsel %vm1722_vm8, %v1873_v21, -inf  ;;  %v2021_v32 = vrot.slane %v2020_v29, 2  ;;  %v2039_v48 = vsel %vm1722_vm8, %v1944_v42, -inf }
 0x60d   : > { %v2059_v30 = vrot.slane %v2058_v28, 4  ;;  %v2040_v50 = vrot.slane %v2039_v48, 4 }
 0x60e   : > { %v2022_v35 = vmax.f32 %v2020_v29, %v2021_v32 }
 0x60f   : > { %v2060_v33 = vmax.f32 %v2058_v28, %v2059_v30  ;;  %v2041_v51 = vmax.f32 %v2039_v48, %v2040_v50  ;;  %v2002_v28 = vpop.xlane.xlu1 %2001 }
 0x610   : > { %v2023_v37 = vrot.slane %v2022_v35, 1 }
 0x611   : > { %v2061_v36 = vrot.slane %v2060_v33, 2  ;;  %v2042_v52 = vrot.slane %v2041_v51, 2 }
 0x612   : > { %v2024_v40 = vmax.f32 %v2022_v35, %v2023_v37 }
 0x613   : > { %v2062_v38 = vmax.f32 %v2060_v33, %v2061_v36  ;;  %v2043_v41 = vmax.f32 %v2041_v51, %v2042_v52  ;;  %v1980_v32 = vpop.xlane.xlu1 %1979 }
 0x614   : > { %v2025_v43 = vsub.f32 %v1802_v16, %v2024_v40  ;;  %v1981_v36 = vrot.slane %v1980_v32, 4 }
 0x615   : > { %v2063_v17 = vrot.slane %v2062_v38, 1  ;;  %v2044_v39 = vrot.slane %v2043_v41, 1 }
 0x616   : > { %v2026_v46 = vmul.f32 1.442695, %v2025_v43 }
 0x617   : > { %v2064_v45 = vmax.f32 %v2062_v38, %v2063_v17  ;;  %v2045_v3 = vmax.f32 %v2043_v41, %v2044_v39  ;;  %v1982_v17 = vadd.f32 %v1981_v36, %v1980_v32 }
 0x618   : > { %2786 = vpow2.f32 %v2026_v46 }
 0x619   : > { %v2065_v47 = vsub.f32 %v1873_v21, %v2064_v45  ;;  %v2046_v58 = vsub.f32 %v1944_v42, %v2045_v3  ;;  %v1983_v43 = vrot.slane %v1982_v17, 2 }
 0x61b   : > { %v2066_v49 = vmul.f32 1.442695, %v2065_v47  ;;  %v2047_v61 = vmul.f32 1.442695, %v2046_v58  ;;  %v1984_v45 = vadd.f32 %v1983_v43, %v1982_v17 }
 0x61d   : > { %2788 = vpow2.f32 %v2066_v49  ;;  %v1985_v46 = vrot.slane %v1984_v45, 1 }
 0x61f   : > { %v1986_v47 = vadd.f32 %v1985_v46, %v1984_v45 }
 0x621   : > { %2626 = vpush %v1986_v47 }
 0x625   : > { %v2787_v54 = vpop.eup %2786 }
 0x626   : > { %v2028_v34 = vsel %vm1722_vm8, %v2787_v54, 0.0 }
 0x627   : > { %v2029_v14 = vrot.slane %v2028_v34, 4 }
 0x629   : > { %v2030_v53 = vadd.f32 %v2029_v14, %v2028_v34 }
 0x62a   : > { %v2789_v24 = vpop.eup %2788 }
 0x62b   : > { %v2068_v1 = vsel %vm1722_vm8, %v2789_v24, 0.0  ;;  %v2031_v25 = vrot.slane %v2030_v53, 2 }
 0x62c   : > { %v2069_v44 = vrot.slane %v2068_v1, 4 }
 0x62d   : > { %v2032_v12 = vadd.f32 %v2031_v25, %v2030_v53 }
 0x62e   : > { %v2070_v22 = vadd.f32 %v2069_v44, %v2068_v1 }
 0x62f   : > { %v2033_v13 = vrot.slane %v2032_v12, 1 }
 0x630   : > { %v2071_v55 = vrot.slane %v2070_v22, 2 }
 0x631   : > { %v2034_v59 = vadd.f32 %v2033_v13, %v2032_v12 }
 0x632   : > { %v2072_v56 = vadd.f32 %v2071_v55, %v2070_v22 }
 0x633   : > { %2790 = vrcp.f32 %v2034_v59 }
 0x634   : > { %v2073_v57 = vrot.slane %v2072_v56, 1 }
 0x636   : > { %v2074_v60 = vadd.f32 %v2073_v57, %v2072_v56 }
 0x638   : > { %2792 = vrcp.f32 %v2074_v60 }
 0x639   : > { %2794 = vpow2.f32 %v2047_v61 }
 0x640   : > { %v2791_v62 = vpop.eup %2790 }
 0x641   : > { %v2036_v63 = vmul.f32 %v2791_v62, %v2787_v54 }
 0x643   : > { %v2077_v4 = vsub.f32 %v2036_v63, %v3351_v2 }
 0x645   : > { %v2793_v0 = vpop.eup %2792  ;;  %v2078_v8 = vand.u32 2147483647, %v2077_v4 }
 0x646   : > { %v2076_v5 = vmul.f32 %v2793_v0, %v2789_v24  ;;  %v2795_v7 = vpop.eup %2794 }
 0x647   : > { %v2079_v10 = vsel %vm1722_vm8, %v2078_v8, 0.0  ;;  %v2049_v15 = vsel %vm1722_vm8, %v2795_v7, 0.0 }
 0x648   : > { %v2105_v9 = vsub.f32 %v2076_v5, %v3351_v2  ;;  %2080 = vadd.xlane.f32.xlu1 %v2079_v10  ;;  %v2050_v18 = vrot.slane %v2049_v15, 4 }
 0x64a   : > { %v2106_v11 = vand.u32 2147483647, %v2105_v9  ;;  %v2051_v19 = vadd.f32 %v2050_v18, %v2049_v15 }
 0x64c   : > { %v2107_v16 = vsel %vm1722_vm8, %v2106_v11, 0.0  ;;  %v2052_v20 = vrot.slane %v2051_v19, 2 }
 0x64d   : > { %2108 = vadd.xlane.f32.xlu1 %v2107_v16 }
 0x64e   : > { %v2053_v21 = vadd.f32 %v2052_v20, %v2051_v19 }
 0x650   : > { %v2054_v23 = vrot.slane %v2053_v21, 1 }
 0x652   : > { %v2055_v26 = vadd.f32 %v2054_v23, %v2053_v21  ;;  %s2627_s26 = spop %2626 }
 0x654   : > { %2796 = vrcp.f32 %v2055_v26 }
 0x661   : > { %v2797_v2 = vpop.eup %2796 }
 0x662   : > { %v2057_v29 = vmul.f32 %v2797_v2, %v2795_v7 }
 0x664   : > { %v2091_v35 = vsub.f32 %v2036_v63, %v2057_v29  ;;  %v1988_v63 = vstv %s2627_s26 }
 0x665   : > { %v1989_v4 = vmul.f32 0.5, %v1988_v63 }
 0x666   : > { %v2092_v40 = vand.u32 2147483647, %v2091_v35 }
 0x667   : > { %v1997_v27 = vpop.xlane.xlu0 %1996 }
 0x668   : > { %2798 = vlog2.f32 %v1997_v27  ;;  %v2093_v42 = vsel %vm1722_vm8, %v2092_v40, 0.0 }
 0x675   : > { %v2799_v30 = vpop.eup %2798 }
 0x676   : > { %v1999_v31 = vmul.f32 0.6931472, %v2799_v30 }
 0x678   : > { %v2000_v33 = vadd.f32 %v1999_v31, %v3353_v6 }
 0x67a   : > { %v2003_v37 = vsub.f32 %v2000_v33, %v2002_v28 }
 0x67c   : > { %v2005_v38 = vsel %vm2004_vm14, %v2003_v37, 0.0 }
 0x67d   : > { %2006 = vadd.xlane.f32.xlu0 %v2005_v38 }
 0x681   : > { %2094 = vadd.xlane.f32.xlu0 %v2093_v42 }
 0x6d1   : > { %v2081_v48 = vpop.xlane.xlu1 %2080 }
 0x6d2   : > { %v2082_v49 = vrot.slane %v2081_v48, 4 }
 0x6d4   : > { %v2083_v6 = vadd.f32 %v2082_v49, %v2081_v48 }
 0x6d6   : > { %v2109_v50 = vpop.xlane.xlu1 %2108  ;;  %v2084_v52 = vrot.slane %v2083_v6, 2 }
 0x6d7   : > { %v2110_v51 = vrot.slane %v2109_v50, 4 }
 0x6d8   : > { %v2085_v53 = vadd.f32 %v2084_v52, %v2083_v6 }
 0x6d9   : > { %v2111_v54 = vadd.f32 %v2110_v51, %v2109_v50 }
 0x6da   : > { %v2086_v3 = vrot.slane %v2085_v53, 1 }
 0x6db   : > { %v2112_v14 = vrot.slane %v2111_v54, 2 }
 0x6dc   : > { %v2087_v59 = vadd.f32 %v2086_v3, %v2085_v53 }
 0x6dd   : > { %v2113_v55 = vadd.f32 %v2112_v14, %v2111_v54 }
 0x6df   : > { %v2114_v57 = vrot.slane %v2113_v55, 1 }
 0x6e1   : > { %v2115_v62 = vadd.f32 %v2114_v57, %v2113_v55 }
 0x706   : > { %v2007_v41 = vpop.xlane.xlu0 %2006 }
 0x707   : > { %v2008_v34 = vrot.slane %v2007_v41, 4 }
 0x709   : > { %v2009_v24 = vadd.f32 %v2008_v34, %v2007_v41 }
 0x70a   : > { %v2095_v1 = vpop.xlane.xlu0 %2094 }
 0x70b   : > { %v2010_v44 = vrot.slane %v2009_v24, 2  ;;  %v2096_v39 = vrot.slane %v2095_v1, 4 }
 0x70d   : > { %v2097_v25 = vadd.f32 %v2096_v39, %v2095_v1  ;;  %v2011_v22 = vadd.f32 %v2010_v44, %v2009_v24 }
 0x70f   : > { %v2098_v12 = vrot.slane %v2097_v25, 2  ;;  %v2012_v13 = vrot.slane %v2011_v22, 1 }
 0x711   : > { %v2099_v56 = vadd.f32 %v2098_v12, %v2097_v25  ;;  %v2013_v58 = vadd.f32 %v2012_v13, %v2011_v22 }
 0x713   : > { %2628 = vpush %v2013_v58  ;;  %v2100_v60 = vrot.slane %v2099_v56, 1 }
 0x714   : > { %2630 = vpush %v2087_v59 }
 0x715   : > { %v2101_v61 = vadd.f32 %v2100_v60, %v2099_v56 }
 0x717   : > { %2632 = vpush %v2101_v61 }
 0x718   : > { %2634 = vpush %v2115_v62 }
 0x744   : > { %s2629_s30 = spop %2628 }
 0x745   : > { %v2015_v0 = vstv %s2629_s30  ;;  %s2631_s9 = spop %2630 }
 0x746   : > { %v2016_v5 = vmul.f32 0.5, %v2015_v0  ;;  %v2089_v8 = vstv %s2631_s9 }
 0x747   : > { %v2090_v7 = vmul.f32 0.25, %v2089_v8 }
 0x748   : > { %v2017_v9 = vadd.f32 %v2016_v5, %v1989_v4  ;;  %s2633_s11 = spop %2632 }
 0x749   : > { %v2103_v10 = vstv %s2633_s11  ;;  %s2635_s12 = spop %2634 }
 0x74a   : > { %v2120_v11 = vsel %vm2119_vm15, %v2017_v9, %v2090_v7  ;;  %v2104_v15 = vmul.f32 0.25, %v2103_v10  ;;  %v2117_v16 = vstv %s2635_s12 }
 0x74b   : > { %v2118_v18 = vmul.f32 0.25, %v2117_v16 }
 0x74c   : > { %v2122_v19 = vsel %vm2121_vm0, %v2120_v11, %v2104_v15 }
 0x74d   : > { %v2124_v20 = vsel %vm2123_vm1, %v2122_v19, %v2118_v18 }
 0x74e   : > { %2126 = vst.msk [vmem:[#allocation6] sm:$0x1] %vm2125_vm2, %v2124_v20 }
 0x74f PF: > { %p2640_p6 = scmp.eq.s32.totalorder %s2890_s25, 1  ;;  %s2843_s13 = smov [#allocation6]  }
 0x750   : > { %s2137_s14 = sshll.u32 %s2843_s13, 4  ;;  %s2138_s14 = int_to_ptr.vmem [resolvable:$true] %s2137_s14 }
 0x751   : > { %s2800_s10 = scalar_lea.vmem %s2138_s14, 16  ;;  %s2806_s15 = scalar_lea.vmem %s2138_s14, 32 }
 0x752   : > { %p2801_p7 = scmp.ne.s32.totalorder %s2138_s14, %s2800_s10  ;;  %p2807_p10 = scmp.lt.s32.totalorder %s2138_s14, %s2138_s14 }
 0x753   : > { %p2808_p11 = scmp.lt.s32.totalorder %s2806_s15, %s2800_s10 }
 0x754   : > { %p2802_p8 = pnand %p2801_p7, %p2640_p6 }
 0x755   : > { %p2809_p12 = por %p2808_p11, %p2807_p10 }
 0x756   : > { %p2803_p9 = pneg %p2802_p8 }
 0x758   : > { %p2810_p13 = pnand %p2809_p12, %p2803_p9 }
 0x75a   : > { %2813 = shalt.err (!%p2810_p13)
}
 0x75b   : > { %2637 = dma.vmem_to_hbm [thread:$0]  (%p2640_p6), %s2138_s14, 16, %s3390_s6, [#allocation7]  }
 0x75c   : > { %2829 = dma.done.wait (%p2640_p6), [#allocation7], 16  }
 0x75d   : > { %2831 = vsyncadd (%p2640_p6), [#allocation7], 4294967280 }
 0x75e PF: > { %s19_s24 = sadd.s32 1, %s2834_s24  }
 0x75f   : > { %p16_p0 = scmp.ge.s32.totalorder %s19_s24, 4  }
 0x761   :  { %18 = sbr.rel (!%p16_p0) target bundleno = 1 (0x1), region = 91 }
 0x766   :  { %2159 = vsyncpa [#allocation7], 1 }
 0x767   :  { %2161 = vsyncpa [#allocation7 + $0x1], 1 }

</bundles_post_ra>
